<compile_context>
chip_gen: v7x
topology: tpu7x:2x2x1
jax: 0.10.0
libtpu: 0.0.40
codegen_flags: <defaults>
</compile_context>

<pallas_src>
import functools

import numpy as np
import jax
import jax.numpy as jnp
from jax import lax
from jax.experimental import pallas as pl
from jax.experimental.pallas import tpu as pltpu

_PREC = lax.Precision.HIGHEST  # used only in the pure-JAX reference


def _ceil_to(x, m):
    return -(-x // m) * m


def _matmul_dtype():
    """bf16 MXU operands on v6e/v7x (single pass); f32 elsewhere (e.g. v5e)."""
    try:
        kind = jax.devices()[0].device_kind.lower()
    except Exception:
        return jnp.float32
    if any(tag in kind for tag in ("v6", "v7", "tpu7")):
        return jnp.bfloat16
    return jnp.float32


# ----------------------------------------------------------------------------
# In-kernel cosine head (f32; rsqrt -> EUP slot, no divide)
# ----------------------------------------------------------------------------
def _cosine_block(vemb, aemb, bz):
    """cos(vemb[i], [aemb[i], aemb[bz], ..., aemb[-1]]) per row i.

    Matches torch.cosine_similarity semantics (each norm clamped to eps=1e-8)."""
    eps2 = 1e-16                                   # (1e-8)**2
    a_pos, a_neg = aemb[:bz], aemb[bz:]            # (bz, L), (n_neg, L)
    dims = (((1,), (1,)), ((), ()))                # contract last dims
    pos_dot = jnp.sum(vemb * a_pos, axis=-1, keepdims=True)            # (bz, 1)
    neg_dot = lax.dot_general(vemb, a_neg, dims,
                              preferred_element_type=jnp.float32)      # (bz, n_neg)
    v2 = jnp.maximum(jnp.sum(vemb * vemb, axis=-1, keepdims=True), eps2)
    p2 = jnp.maximum(jnp.sum(a_pos * a_pos, axis=-1, keepdims=True), eps2)
    ones = jnp.ones((1, vemb.shape[1]), jnp.float32)
    n2 = jnp.maximum(
        lax.dot_general(ones, a_neg * a_neg, dims,
                        preferred_element_type=jnp.float32), eps2)     # (1, n_neg)
    dots = jnp.concatenate([pos_dot, neg_dot], axis=1)                 # (bz, 1+n_neg)
    a2 = jnp.concatenate(
        [p2, jnp.broadcast_to(n2, (vemb.shape[0], n2.shape[1]))], axis=1)
    return dots * lax.rsqrt(v2 * a2)


# ----------------------------------------------------------------------------
# The fused kernel (single pallas_call, no grid, everything VMEM-resident)
# ----------------------------------------------------------------------------
def _vakm_kernel(x_ref, w_ref, o_ref, *, plan):
    p = plan
    mm_dt = p["mm_dtype"]

    def mm(a, b):
        # bf16 operands on v6e/v7x, f32 on v5e; always f32 accumulation.
        return jnp.dot(a.astype(mm_dt), b.astype(mm_dt),
                       preferred_element_type=jnp.float32)

    def wblk(name):
        r0, nr, nc = p["slots"][name]
        return w_ref[r0:r0 + nr, 0:nc]

    def masks(n, length, nc):
        """Per-sample core mask (n, nc) and global core mask (1, nc)."""
        lp = length + 2
        j = lax.broadcasted_iota(jnp.int32, (n, nc), 0)
        m = lax.broadcasted_iota(jnp.int32, (n, nc), 1)
        lo = j * lp
        cs = jnp.logical_and(m >= lo + 1, m <= lo + length).astype(jnp.float32)
        return cs, jnp.max(cs, axis=0, keepdims=True)

    def conv(x, w_aug, mask):
        """Conv1d(k=3, s=1, p=1) over a batch-folded slab: ONE MXU matmul.

        w_aug is (Cout, 3*Cin + 1) with the bias as the last column, matched
        against the core-mask row appended to the shifted stack.  The lane
        rolls wrap columns 0 <-> NC-1, both always zero halo/tail columns
        (asserted in the wrapper), so they are exact zero shifts."""
        nc = x.shape[1]
        stack = jnp.concatenate(
            [pltpu.roll(x, 1, axis=1),        # x[:, m-1]  (tap k=0)
             x,                               # x[:, m]    (tap k=1)
             pltpu.roll(x, nc - 1, axis=1),   # x[:, m+1]  (tap k=2)
             mask], axis=0)
        return mm(w_aug, stack) * mask

    cp, nca, ncv = p["cp"], p["nca"], p["ncv"]
    n_a, bz, l_a = p["n_a"], p["bz"], p["l_a"]

    a_x = x_ref[:, 0:nca]                      # (cp, NCa)
    v_x = x_ref[:, nca:nca + ncv]              # (cp, NCv), 128-aligned col offset

    a_smask, a_mask = masks(n_a, l_a, nca)
    v_smask, v_mask = masks(bz, p["l_v"], ncv)

    # ---- audio trunk (pos + neg batch-folded into lanes) ----
    ah = conv(conv(a_x, wblk("ae1"), a_mask), wblk("ae2"), a_mask)       # (64, NCa)
    am = conv(ah, wblk("am1x"), a_mask)          # fused aemb-conv1 + aaux conv
    aemb_row = conv(am[0:32, :], wblk("am2"), a_mask)                    # (1, NCa)
    aaux_row = am[32:33, :]                                              # (1, NCa)

    # ---- video trunk ----
    vh = conv(conv(conv(v_x, wblk("ve1"), v_mask), wblk("ve2"), v_mask),
              wblk("ve3"), v_mask)                                       # (64, NCv)
    vrow = conv(conv(vh, wblk("vm1"), v_mask), wblk("vm2"), v_mask)      # (1, NCv)

    # ---- slab rows -> per-sample matrices / heads (gathers pre-folded) ----
    aemb = mm(a_smask * aemb_row, wblk("a_uns"))                         # (N_a, L_a)
    vemb = mm(v_smask * vrow, wblk("w_vl")) + wblk("vlb")                # (B, L_a)

    ro, wo = p["out_rows"], p["out_cols"]

    def place(v, rows, cols):
        r, c = v.shape
        if c < cols:
            v = jnp.concatenate([v, jnp.zeros((r, cols - c), v.dtype)], axis=1)
        if r < rows:
            v = jnp.concatenate([v, jnp.zeros((rows - r, cols), v.dtype)], axis=0)
        return v

    if p["with_neg"]:
        kpred = mm(a_smask * aaux_row, wblk("w_ak")) + wblk("axlb")      # (N_a, K)
        cos = _cosine_block(vemb, aemb, bz)                              # (B, 1+nneg)
        o_ref[...] = jnp.concatenate(
            [place(cos, ro[0], wo), place(kpred, ro[1], wo)], axis=0)
    else:
        o_ref[...] = jnp.concatenate(
            [place(aemb, ro[0], wo), place(vemb, ro[1], wo)], axis=0)


# ----------------------------------------------------------------------------
# Wrapper-side layout plumbing (slabs, weight packing, gather folding)
# ----------------------------------------------------------------------------
def _slab_geom(n, length):
    """Geometry of a batch-folded slab: n samples of `length` (+2 halo each)."""
    lp = length + 2
    cols = n * lp
    nc = _ceil_to(max(cols, 128), 128)
    m = np.arange(nc)
    core = (m < cols) & (m % lp >= 1) & (m % lp <= length)
    pos = np.where(core, (m % lp) - 1, 0).astype(np.int32)
    # pltpu.roll wrap-around invariant: first/last slab columns are halo/tail.
    assert (not core[0]) and (not core[nc - 1])
    return nc, core, pos


def _to_slab(x, cp, nc):
    """(N, C, L) -> (cp, nc) slab: channel-padded, 1-col zero halo per sample."""
    n, c, length = x.shape
    xp = jnp.pad(x.astype(jnp.float32), ((0, 0), (0, cp - c), (1, 1)))
    slab = jnp.transpose(xp, (1, 0, 2)).reshape(cp, n * (length + 2))
    return jnp.pad(slab, ((0, 0), (0, nc - n * (length + 2))))


def _conv_aug(w, b, cin_pad):
    """(Cout, Cin, 3), (Cout,) -> (Cout, 3*cin_pad + 1), tap-major, bias last."""
    cout, cin, kk = w.shape
    wp = jnp.pad(w.astype(jnp.float32), ((0, 0), (0, cin_pad - cin), (0, 0)))
    w3 = jnp.swapaxes(wp, 1, 2).reshape(cout, kk * cin_pad)
    return jnp.concatenate([w3, b.reshape(cout, 1).astype(jnp.float32)], axis=1)


def _fold_head(w, core, pos):
    """Fold the column->position gather into a linear weight (exact selection).

    w: (Dout, Din) PyTorch layout.  Returns (NC, Dout) such that
    (per-sample-mask * slab_row) @ result == per_sample(slab_row) @ w.T."""
    sel = jnp.take(w.T.astype(jnp.float32), jnp.asarray(pos), axis=0)
    return jnp.where(jnp.asarray(core)[:, None], sel, 0.0)


def _uns_matrix(core, pos, length):
    """0/1 gather matrix (NC, length): slab column -> per-sample position."""
    uns = np.zeros((core.shape[0], length), np.float32)
    idx = np.nonzero(core)[0]
    uns[idx, pos[idx]] = 1.0
    return jnp.asarray(uns)


def _pack_slab(blocks):
    """[(name, 2-D array)] -> one (8,128)-aligned slab + {name: (row0, r, c)}."""
    width = _ceil_to(max(a.shape[1] for _, a in blocks), 128)
    rows, slots, r0 = [], {}, 0
    for name, arr in blocks:
        nr, nc = arr.shape
        nr8 = _ceil_to(nr, 8)
        rows.append(jnp.pad(arr.astype(jnp.float32),
                            ((0, nr8 - nr), (0, width - nc))))
        slots[name] = (r0, nr, nc)
        r0 += nr8
    return jnp.concatenate(rows, axis=0), slots


def _pallas_forward(params, a_all, vfeat, bz, *, with_neg):
    n_a, c_a, l_a = a_all.shape
    _, c_v, l_v = vfeat.shape
    kn = params["aaux_linear"][0].shape[0]

    cp = _ceil_to(max(c_a, c_v), 8)            # shared, sublane-aligned channels
    nca, core_a, pos_a = _slab_geom(n_a, l_a)
    ncv, core_v, pos_v = _slab_geom(bz, l_v)

    # -- operand 1: activation slab (audio | video side by side in lanes) --
    x_slab = jnp.concatenate(
        [_to_slab(a_all, cp, nca), _to_slab(vfeat, cp, ncv)], axis=1)

    # -- operand 2: weight slab (conv weights+bias, folded head weights) --
    (ae1, ae2) = params["audio_extractor"]
    (am1, am2) = params["aemb_extractor"]
    ax = params["aaux_conv"]
    ve1, ve2, ve3 = params["video_extractor"]
    vm1, vm2 = params["vemb_conv"]
    axl_w, axl_b = params["aaux_linear"]
    vl_w, vl_b = params["vemb_linear"]

    blocks = [
        ("ae1", _conv_aug(*ae1, cp)), ("ae2", _conv_aug(*ae2, 32)),
        # aemb conv1 (Cout=32) fused with the aaux conv (Cout=1): one matmul.
        ("am1x", jnp.concatenate([_conv_aug(*am1, 64), _conv_aug(*ax, 64)],
                                 axis=0)),
        ("am2", _conv_aug(*am2, 32)),
        ("ve1", _conv_aug(*ve1, cp)), ("ve2", _conv_aug(*ve2, 32)),
        ("ve3", _conv_aug(*ve3, 64)),
        ("vm1", _conv_aug(*vm1, 64)), ("vm2", _conv_aug(*vm2, 32)),
        ("a_uns", _uns_matrix(core_a, pos_a, l_a)),
        ("w_vl", _fold_head(vl_w, core_v, pos_v)),
        ("vlb", vl_b.reshape(1, -1).astype(jnp.float32)),
    ]
    if with_neg:
        blocks += [("w_ak", _fold_head(axl_w, core_a, pos_a)),
                   ("axlb", axl_b.reshape(1, -1).astype(jnp.float32))]
    w_slab, slots = _pack_slab(blocks)

    if with_neg:
        out_rows = (_ceil_to(bz, 8), _ceil_to(n_a, 8))
        out_cols = _ceil_to(max(1 + (n_a - bz), kn), 128)
    else:
        out_rows = (_ceil_to(n_a, 8), _ceil_to(bz, 8))
        out_cols = _ceil_to(l_a, 128)

    plan = dict(cp=cp, nca=nca, ncv=ncv, n_a=n_a, bz=bz, l_a=l_a, l_v=l_v,
                k=kn, with_neg=with_neg, slots=slots,
                out_rows=out_rows, out_cols=out_cols,
                mm_dtype=_matmul_dtype())

    # No grid: both operands and the packed output are whole-array VMEM blocks
    # (<1 MiB total), so the fused body sees everything resident in VMEM with
    # exactly 2 input DMAs + 1 writeback DMA.  If batch/sequence grows, widen
    # the lane slab (and on v7x split the two trunks across TensorCores)
    # rather than adding a batch grid axis.
    out = pl.pallas_call(
        functools.partial(_vakm_kernel, plan=plan),
        out_shape=jax.ShapeDtypeStruct((sum(out_rows), out_cols), jnp.float32),
    )(x_slab, w_slab)

    if with_neg:
        cos_sim = out[:bz, :1 + (n_a - bz)]
        k_preds = out[out_rows[0]:out_rows[0] + n_a, :kn]
        return cos_sim, k_preds
    aemb = out[:n_a, :l_a]
    vemb = out[out_rows[0]:out_rows[0] + bz, :l_a]
    return aemb, vemb


# ----------------------------------------------------------------------------
# VAKM forward pass (same return modes as the PyTorch module)
# ----------------------------------------------------------------------------
def vakm_forward(params, afeat, vfeat, neg_afeat=None, pos_ki=None, neg_ki=None):
    bz = afeat.shape[0]
    if neg_afeat is None:
        aemb, vemb = _pallas_forward(params, afeat, vfeat, bz, with_neg=False)
        return aemb, vemb

    a_all = jnp.concatenate([afeat, neg_afeat], axis=0)       # pos then neg
    cos_sim, k_preds = _pallas_forward(params, a_all, vfeat, bz, with_neg=True)
    # TODO(synk): PyTorch emits int64 labels; JAX defaults to int32 here.
    labels = jnp.zeros((bz,), jnp.int32)
    if neg_ki is None or pos_ki is None:
        return cos_sim, labels
    k_labels = jnp.concatenate([pos_ki, neg_ki], axis=0)
    return cos_sim, labels, k_preds, k_labels


# ----------------------------------------------------------------------------
# Parameter construction (PyTorch-default-style uniform init, f32)
# ----------------------------------------------------------------------------
def _init_conv(key, cout, cin, k=3):
    k1, k2 = jax.random.split(key)
    bound = 1.0 / np.sqrt(cin * k)
    w = jax.random.uniform(k1, (cout, cin, k), jnp.float32, -bound, bound)
    b = jax.random.uniform(k2, (cout,), jnp.float32, -bound, bound)
    return w, b


def _init_linear(key, dout, din):
    k1, k2 = jax.random.split(key)
    bound = 1.0 / np.sqrt(din)
    w = jax.random.uniform(k1, (dout, din), jnp.float32, -bound, bound)
    b = jax.random.uniform(k2, (dout,), jnp.float32, -bound, bound)
    return w, b


def init_params(cfg, seed=0):
    c_a, l_a = cfg["audio_feat_shape"]
    c_v, l_v = cfg["video_feat_shape"]
    k = cfg["kmeans_num"]
    keys = jax.random.split(jax.random.PRNGKey(seed), 12)
    return {
        "audio_extractor": [_init_conv(keys[0], 32, c_a),
                            _init_conv(keys[1], 64, 32)],
        "aemb_extractor": [_init_conv(keys[2], 32, 64),
                           _init_conv(keys[3], 1, 32)],
        "aaux_conv": _init_conv(keys[4], 1, 64),
        "aaux_linear": _init_linear(keys[5], k, l_a),
        "video_extractor": [_init_conv(keys[6], 32, c_v),
                            _init_conv(keys[7], 64, 32),
                            _init_conv(keys[8], 64, 64)],
        "vemb_conv": [_init_conv(keys[9], 32, 64),
                      _init_conv(keys[10], 1, 32)],
        "vemb_linear": _init_linear(keys[11], l_a, l_v),
    }


# ----------------------------------------------------------------------------
# Pure-JAX reference (mirrors the PyTorch module), for correctness checking
# ----------------------------------------------------------------------------
def _conv1d_ref(x, w, b):
    length = x.shape[-1]
    xp = jnp.pad(x, ((0, 0), (0, 0), (1, 1)))
    out = sum(jnp.einsum("oc,ncl->nol", w[:, :, k], xp[:, :, k:k + length],
                         precision=_PREC) for k in range(3))
    return out + b[None, :, None]


def _linear_ref(x, w, b):
    return jnp.einsum("nd,kd->nk", x, w, precision=_PREC) + b


def _forward_ref(params, afeat, vfeat, neg_afeat):
    def chain(x, layers):
        for w, b in layers:
            x = _conv1d_ref(x, w, b)
        return x

    a_all = jnp.concatenate([afeat, neg_afeat], axis=0)
    ah = chain(a_all, params["audio_extractor"])
    aemb = chain(ah, params["aemb_extractor"])[:, 0, :]
    aaux = _conv1d_ref(ah, *params["aaux_conv"])[:, 0, :]
    kpred = _linear_ref(aaux, *params["aaux_linear"])
    vh = chain(vfeat, params["video_extractor"])
    vemb = _linear_ref(chain(vh, params["vemb_conv"])[:, 0, :],
                       *params["vemb_linear"])

    bz = afeat.shape[0]
    pos, neg = aemb[:bz], aemb[bz:]
    total = jnp.concatenate(
        [pos[:, None, :], jnp.broadcast_to(neg[None], (bz,) + neg.shape)], axis=1)
    dots = jnp.sum(vemb[:, None, :] * total, -1)
    v2 = jnp.maximum(jnp.sum(vemb * vemb, -1, keepdims=True), 1e-16)
    a2 = jnp.maximum(jnp.sum(total * total, -1), 1e-16)
    cos = dots / jnp.sqrt(v2 * a2)
    return cos, kpred, aemb, vemb


# ----------------------------------------------------------------------------
# Demo
# ----------------------------------------------------------------------------
if __name__ == "__main__":
    cfg = {
        "audio_feat_shape": (4, 16),   # (C_a, L_a)
        "video_feat_shape": (8, 24),   # (C_v, L_v)
        "kmeans_num": 5,
    }
    params = init_params(cfg, seed=0)

    key = jax.random.PRNGKey(0)
    k1, k2, k3, k4, k5 = jax.random.split(key, 5)
    B, N_NEG = 2, 3
    afeat = jax.random.normal(k1, (B, *cfg["audio_feat_shape"]), jnp.float32)
    vfeat = jax.random.normal(k2, (B, *cfg["video_feat_shape"]), jnp.float32)
    neg_afeat = jax.random.normal(k3, (N_NEG, *cfg["audio_feat_shape"]),
                                  jnp.float32)
    pos_ki = jax.random.randint(k4, (B,), 0, cfg["kmeans_num"], jnp.int32)
    neg_ki = jax.random.randint(k5, (N_NEG,), 0, cfg["kmeans_num"], jnp.int32)

    fwd = jax.jit(vakm_forward)

    # full contrastive path (single fused pallas_call)
    cos_sim, labels, k_preds, k_labels = fwd(params, afeat, vfeat, neg_afeat,
                                             pos_ki, neg_ki)
    jax.block_until_ready((cos_sim, labels, k_preds, k_labels))

    # embedding-only path (neg_afeat is None), second fused kernel
    aemb, vemb = fwd(params, afeat, vfeat, None)
    jax.block_until_ready((aemb, vemb))

    # shape checks
    assert cos_sim.shape == (B, 1 + N_NEG)
    assert labels.shape == (B,)
    assert k_preds.shape == (B + N_NEG, cfg["kmeans_num"])
    assert k_labels.shape == (B + N_NEG,)
    assert aemb.shape == (B, cfg["audio_feat_shape"][1])
    assert vemb.shape == (B, cfg["audio_feat_shape"][1])

    # numerical check against a pure-JAX reference of the PyTorch module
    # (loose tolerance absorbs MXU precision / bf16-operand differences)
    cos_r, kpred_r, aemb_r, vemb_r = _forward_ref(params, afeat, vfeat, neg_afeat)
    assert jnp.allclose(cos_sim, cos_r, rtol=0.1, atol=0.1)
    assert jnp.allclose(k_preds, kpred_r, rtol=0.1, atol=0.1)
    assert jnp.allclose(aemb, aemb_r[:B], rtol=0.1, atol=0.1)
    assert jnp.allclose(vemb, vemb_r, rtol=0.1, atol=0.1)

    print("KERNEL_OK")
</pallas_src>

<mosaic_0001>
module attributes {stable_mosaic.version = 11 : i64} {
  func.func @_vakm_kernel(%arg0: memref<8x256xf32, #tpu.memory_space<vmem>>, %arg1: memref<744x256xf32, #tpu.memory_space<vmem>>, %arg2: memref<16x128xf32, #tpu.memory_space<vmem>>) attributes {dimension_semantics = [], scalar_prefetch = 0 : i64, scratch_operands = 0 : i64, tpu.core_type = #tpu.core_type<tc>} {
    %c0 = arith.constant 0 : index
    %c0_0 = arith.constant 0 : index
    %0 = vector.load %arg0[%c0, %c0_0] : memref<8x256xf32, #tpu.memory_space<vmem>>, vector<8x128xf32>
    %c0_1 = arith.constant 0 : index
    %c128 = arith.constant 128 : index
    %1 = vector.load %arg0[%c0_1, %c128] : memref<8x256xf32, #tpu.memory_space<vmem>>, vector<8x128xf32>
    %2 = tpu.iota {dimensions = array<i32: 0>} : vector<5x128xi32>
    %3 = tpu.iota {dimensions = array<i32: 1>} : vector<5x128xi32>
    %c18_i32 = arith.constant 18 : i32
    %4 = vector.broadcast %c18_i32 : i32 to vector<5x128xi32>
    %5 = arith.muli %2, %4 : vector<5x128xi32>
    %c1_i32 = arith.constant 1 : i32
    %6 = vector.broadcast %c1_i32 : i32 to vector<5x128xi32>
    %7 = arith.addi %5, %6 : vector<5x128xi32>
    %8 = arith.cmpi sge, %3, %7 : vector<5x128xi32>
    %c16_i32 = arith.constant 16 : i32
    %9 = vector.broadcast %c16_i32 : i32 to vector<5x128xi32>
    %10 = arith.addi %5, %9 : vector<5x128xi32>
    %11 = arith.cmpi sle, %3, %10 : vector<5x128xi32>
    %12 = arith.andi %8, %11 : vector<5x128xi1>
    %13 = arith.extui %12 : vector<5x128xi1> to vector<5x128xi32>
    %14 = arith.sitofp %13 : vector<5x128xi32> to vector<5x128xf32>
    %cst = arith.constant dense<0xFF800000> : vector<128xf32>
    %15 = vector.multi_reduction <maximumf>, %14, %cst [0] : vector<5x128xf32> to vector<128xf32>
    %16 = vector.shape_cast %15 : vector<128xf32> to vector<1x128xf32>
    %17 = tpu.iota {dimensions = array<i32: 0>} : vector<2x128xi32>
    %18 = tpu.iota {dimensions = array<i32: 1>} : vector<2x128xi32>
    %c26_i32 = arith.constant 26 : i32
    %19 = vector.broadcast %c26_i32 : i32 to vector<2x128xi32>
    %20 = arith.muli %17, %19 : vector<2x128xi32>
    %c1_i32_2 = arith.constant 1 : i32
    %21 = vector.broadcast %c1_i32_2 : i32 to vector<2x128xi32>
    %22 = arith.addi %20, %21 : vector<2x128xi32>
    %23 = arith.cmpi sge, %18, %22 : vector<2x128xi32>
    %c24_i32 = arith.constant 24 : i32
    %24 = vector.broadcast %c24_i32 : i32 to vector<2x128xi32>
    %25 = arith.addi %20, %24 : vector<2x128xi32>
    %26 = arith.cmpi sle, %18, %25 : vector<2x128xi32>
    %27 = arith.andi %23, %26 : vector<2x128xi1>
    %28 = arith.extui %27 : vector<2x128xi1> to vector<2x128xi32>
    %29 = arith.sitofp %28 : vector<2x128xi32> to vector<2x128xf32>
    %cst_3 = arith.constant dense<0xFF800000> : vector<128xf32>
    %30 = vector.multi_reduction <maximumf>, %29, %cst_3 [0] : vector<2x128xf32> to vector<128xf32>
    %31 = vector.shape_cast %30 : vector<128xf32> to vector<1x128xf32>
    %c0_4 = arith.constant 0 : index
    %c0_5 = arith.constant 0 : index
    %32 = vector.load %arg1[%c0_4, %c0_5] : memref<744x256xf32, #tpu.memory_space<vmem>>, vector<32x25xf32>
    %c1_i32_6 = arith.constant 1 : i32
    %33 = tpu.dynamic_rotate %0 by %c1_i32_6 dim 1 : vector<8x128xf32>, i32 -> vector<8x128xf32>
    %c127_i32 = arith.constant 127 : i32
    %34 = tpu.dynamic_rotate %0 by %c127_i32 dim 1 : vector<8x128xf32>, i32 -> vector<8x128xf32>
    %35 = tpu.concatenate %33, %0, %34, %16 in 0 : vector<8x128xf32>, vector<8x128xf32>, vector<8x128xf32>, vector<1x128xf32> -> vector<25x128xf32>
    %cst_7 = arith.constant dense<0.000000e+00> : vector<32x128xf32>
    %36 = tpu.matmul %32, %35, %cst_7 {dimension_numbers = #tpu.dot_dimension_numbers<[1], [0], [0], [1], [0, 0, 1, 1], [], []>} : vector<32x25xf32>, vector<25x128xf32>, vector<32x128xf32> -> vector<32x128xf32>
    %37 = vector.broadcast %16 : vector<1x128xf32> to vector<32x128xf32>
    %38 = arith.mulf %36, %37 : vector<32x128xf32>
    %c32 = arith.constant 32 : index
    %c0_8 = arith.constant 0 : index
    %39 = vector.load %arg1[%c32, %c0_8] : memref<744x256xf32, #tpu.memory_space<vmem>>, vector<64x97xf32>
    %c1_i32_9 = arith.constant 1 : i32
    %40 = tpu.dynamic_rotate %38 by %c1_i32_9 dim 1 : vector<32x128xf32>, i32 -> vector<32x128xf32>
    %c127_i32_10 = arith.constant 127 : i32
    %41 = tpu.dynamic_rotate %38 by %c127_i32_10 dim 1 : vector<32x128xf32>, i32 -> vector<32x128xf32>
    %42 = tpu.concatenate %40, %38, %41, %16 in 0 : vector<32x128xf32>, vector<32x128xf32>, vector<32x128xf32>, vector<1x128xf32> -> vector<97x128xf32>
    %cst_11 = arith.constant dense<0.000000e+00> : vector<64x128xf32>
    %43 = tpu.matmul %39, %42, %cst_11 {dimension_numbers = #tpu.dot_dimension_numbers<[1], [0], [0], [1], [0, 0, 1, 1], [], []>} : vector<64x97xf32>, vector<97x128xf32>, vector<64x128xf32> -> vector<64x128xf32>
    %44 = vector.broadcast %16 : vector<1x128xf32> to vector<64x128xf32>
    %45 = arith.mulf %43, %44 : vector<64x128xf32>
    %c96 = arith.constant 96 : index
    %c0_12 = arith.constant 0 : index
    %46 = vector.load %arg1[%c96, %c0_12] : memref<744x256xf32, #tpu.memory_space<vmem>>, vector<33x193xf32>
    %c1_i32_13 = arith.constant 1 : i32
    %47 = tpu.dynamic_rotate %45 by %c1_i32_13 dim 1 : vector<64x128xf32>, i32 -> vector<64x128xf32>
    %c127_i32_14 = arith.constant 127 : i32
    %48 = tpu.dynamic_rotate %45 by %c127_i32_14 dim 1 : vector<64x128xf32>, i32 -> vector<64x128xf32>
    %49 = tpu.concatenate %47, %45, %48, %16 in 0 : vector<64x128xf32>, vector<64x128xf32>, vector<64x128xf32>, vector<1x128xf32> -> vector<193x128xf32>
    %cst_15 = arith.constant dense<0.000000e+00> : vector<33x128xf32>
    %50 = tpu.matmul %46, %49, %cst_15 {dimension_numbers = #tpu.dot_dimension_numbers<[1], [0], [0], [1], [0, 0, 1, 1], [], []>} : vector<33x193xf32>, vector<193x128xf32>, vector<33x128xf32> -> vector<33x128xf32>
    %51 = vector.broadcast %16 : vector<1x128xf32> to vector<33x128xf32>
    %52 = arith.mulf %50, %51 : vector<33x128xf32>
    %53 = vector.extract_strided_slice %52 {offsets = [0, 0], sizes = [32, 128], strides = [1, 1]} : vector<33x128xf32> to vector<32x128xf32>
    %c136 = arith.constant 136 : index
    %c0_16 = arith.constant 0 : index
    %54 = vector.load %arg1[%c136, %c0_16] : memref<744x256xf32, #tpu.memory_space<vmem>>, vector<1x97xf32>
    %c1_i32_17 = arith.constant 1 : i32
    %55 = tpu.dynamic_rotate %53 by %c1_i32_17 dim 1 : vector<32x128xf32>, i32 -> vector<32x128xf32>
    %c127_i32_18 = arith.constant 127 : i32
    %56 = tpu.dynamic_rotate %53 by %c127_i32_18 dim 1 : vector<32x128xf32>, i32 -> vector<32x128xf32>
    %57 = tpu.concatenate %55, %53, %56, %16 in 0 : vector<32x128xf32>, vector<32x128xf32>, vector<32x128xf32>, vector<1x128xf32> -> vector<97x128xf32>
    %cst_19 = arith.constant dense<0.000000e+00> : vector<1x128xf32>
    %58 = tpu.matmul %54, %57, %cst_19 {dimension_numbers = #tpu.dot_dimension_numbers<[1], [0], [0], [1], [0, 0, 1, 1], [], []>} : vector<1x97xf32>, vector<97x128xf32>, vector<1x128xf32> -> vector<1x128xf32>
    %59 = arith.mulf %58, %16 : vector<1x128xf32>
    %60 = vector.extract_strided_slice %52 {offsets = [32, 0], sizes = [1, 128], strides = [1, 1]} : vector<33x128xf32> to vector<1x128xf32>
    %c144 = arith.constant 144 : index
    %c0_20 = arith.constant 0 : index
    %61 = vector.load %arg1[%c144, %c0_20] : memref<744x256xf32, #tpu.memory_space<vmem>>, vector<32x25xf32>
    %c1_i32_21 = arith.constant 1 : i32
    %62 = tpu.dynamic_rotate %1 by %c1_i32_21 dim 1 : vector<8x128xf32>, i32 -> vector<8x128xf32>
    %c127_i32_22 = arith.constant 127 : i32
    %63 = tpu.dynamic_rotate %1 by %c127_i32_22 dim 1 : vector<8x128xf32>, i32 -> vector<8x128xf32>
    %64 = tpu.concatenate %62, %1, %63, %31 in 0 : vector<8x128xf32>, vector<8x128xf32>, vector<8x128xf32>, vector<1x128xf32> -> vector<25x128xf32>
    %cst_23 = arith.constant dense<0.000000e+00> : vector<32x128xf32>
    %65 = tpu.matmul %61, %64, %cst_23 {dimension_numbers = #tpu.dot_dimension_numbers<[1], [0], [0], [1], [0, 0, 1, 1], [], []>} : vector<32x25xf32>, vector<25x128xf32>, vector<32x128xf32> -> vector<32x128xf32>
    %66 = vector.broadcast %31 : vector<1x128xf32> to vector<32x128xf32>
    %67 = arith.mulf %65, %66 : vector<32x128xf32>
    %c176 = arith.constant 176 : index
    %c0_24 = arith.constant 0 : index
    %68 = vector.load %arg1[%c176, %c0_24] : memref<744x256xf32, #tpu.memory_space<vmem>>, vector<64x97xf32>
    %c1_i32_25 = arith.constant 1 : i32
    %69 = tpu.dynamic_rotate %67 by %c1_i32_25 dim 1 : vector<32x128xf32>, i32 -> vector<32x128xf32>
    %c127_i32_26 = arith.constant 127 : i32
    %70 = tpu.dynamic_rotate %67 by %c127_i32_26 dim 1 : vector<32x128xf32>, i32 -> vector<32x128xf32>
    %71 = tpu.concatenate %69, %67, %70, %31 in 0 : vector<32x128xf32>, vector<32x128xf32>, vector<32x128xf32>, vector<1x128xf32> -> vector<97x128xf32>
    %cst_27 = arith.constant dense<0.000000e+00> : vector<64x128xf32>
    %72 = tpu.matmul %68, %71, %cst_27 {dimension_numbers = #tpu.dot_dimension_numbers<[1], [0], [0], [1], [0, 0, 1, 1], [], []>} : vector<64x97xf32>, vector<97x128xf32>, vector<64x128xf32> -> vector<64x128xf32>
    %73 = vector.broadcast %31 : vector<1x128xf32> to vector<64x128xf32>
    %74 = arith.mulf %72, %73 : vector<64x128xf32>
    %c240 = arith.constant 240 : index
    %c0_28 = arith.constant 0 : index
    %75 = vector.load %arg1[%c240, %c0_28] : memref<744x256xf32, #tpu.memory_space<vmem>>, vector<64x193xf32>
    %c1_i32_29 = arith.constant 1 : i32
    %76 = tpu.dynamic_rotate %74 by %c1_i32_29 dim 1 : vector<64x128xf32>, i32 -> vector<64x128xf32>
    %c127_i32_30 = arith.constant 127 : i32
    %77 = tpu.dynamic_rotate %74 by %c127_i32_30 dim 1 : vector<64x128xf32>, i32 -> vector<64x128xf32>
    %78 = tpu.concatenate %76, %74, %77, %31 in 0 : vector<64x128xf32>, vector<64x128xf32>, vector<64x128xf32>, vector<1x128xf32> -> vector<193x128xf32>
    %cst_31 = arith.constant dense<0.000000e+00> : vector<64x128xf32>
    %79 = tpu.matmul %75, %78, %cst_31 {dimension_numbers = #tpu.dot_dimension_numbers<[1], [0], [0], [1], [0, 0, 1, 1], [], []>} : vector<64x193xf32>, vector<193x128xf32>, vector<64x128xf32> -> vector<64x128xf32>
    %80 = vector.broadcast %31 : vector<1x128xf32> to vector<64x128xf32>
    %81 = arith.mulf %79, %80 : vector<64x128xf32>
    %c304 = arith.constant 304 : index
    %c0_32 = arith.constant 0 : index
    %82 = vector.load %arg1[%c304, %c0_32] : memref<744x256xf32, #tpu.memory_space<vmem>>, vector<32x193xf32>
    %c1_i32_33 = arith.constant 1 : i32
    %83 = tpu.dynamic_rotate %81 by %c1_i32_33 dim 1 : vector<64x128xf32>, i32 -> vector<64x128xf32>
    %c127_i32_34 = arith.constant 127 : i32
    %84 = tpu.dynamic_rotate %81 by %c127_i32_34 dim 1 : vector<64x128xf32>, i32 -> vector<64x128xf32>
    %85 = tpu.concatenate %83, %81, %84, %31 in 0 : vector<64x128xf32>, vector<64x128xf32>, vector<64x128xf32>, vector<1x128xf32> -> vector<193x128xf32>
    %cst_35 = arith.constant dense<0.000000e+00> : vector<32x128xf32>
    %86 = tpu.matmul %82, %85, %cst_35 {dimension_numbers = #tpu.dot_dimension_numbers<[1], [0], [0], [1], [0, 0, 1, 1], [], []>} : vector<32x193xf32>, vector<193x128xf32>, vector<32x128xf32> -> vector<32x128xf32>
    %87 = vector.broadcast %31 : vector<1x128xf32> to vector<32x128xf32>
    %88 = arith.mulf %86, %87 : vector<32x128xf32>
    %c336 = arith.constant 336 : index
    %c0_36 = arith.constant 0 : index
    %89 = vector.load %arg1[%c336, %c0_36] : memref<744x256xf32, #tpu.memory_space<vmem>>, vector<1x97xf32>
    %c1_i32_37 = arith.constant 1 : i32
    %90 = tpu.dynamic_rotate %88 by %c1_i32_37 dim 1 : vector<32x128xf32>, i32 -> vector<32x128xf32>
    %c127_i32_38 = arith.constant 127 : i32
    %91 = tpu.dynamic_rotate %88 by %c127_i32_38 dim 1 : vector<32x128xf32>, i32 -> vector<32x128xf32>
    %92 = tpu.concatenate %90, %88, %91, %31 in 0 : vector<32x128xf32>, vector<32x128xf32>, vector<32x128xf32>, vector<1x128xf32> -> vector<97x128xf32>
    %cst_39 = arith.constant dense<0.000000e+00> : vector<1x128xf32>
    %93 = tpu.matmul %89, %92, %cst_39 {dimension_numbers = #tpu.dot_dimension_numbers<[1], [0], [0], [1], [0, 0, 1, 1], [], []>} : vector<1x97xf32>, vector<97x128xf32>, vector<1x128xf32> -> vector<1x128xf32>
    %94 = arith.mulf %93, %31 : vector<1x128xf32>
    %95 = vector.broadcast %59 : vector<1x128xf32> to vector<5x128xf32>
    %96 = arith.mulf %14, %95 : vector<5x128xf32>
    %c344 = arith.constant 344 : index
    %c0_40 = arith.constant 0 : index
    %97 = vector.load %arg1[%c344, %c0_40] : memref<744x256xf32, #tpu.memory_space<vmem>>, vector<128x16xf32>
    %cst_41 = arith.constant dense<0.000000e+00> : vector<5x16xf32>
    %98 = tpu.matmul %96, %97, %cst_41 {dimension_numbers = #tpu.dot_dimension_numbers<[1], [0], [0], [1], [0, 0, 1, 1], [], []>} : vector<5x128xf32>, vector<128x16xf32>, vector<5x16xf32> -> vector<5x16xf32>
    %99 = vector.broadcast %94 : vector<1x128xf32> to vector<2x128xf32>
    %100 = arith.mulf %29, %99 : vector<2x128xf32>
    %c472 = arith.constant 472 : index
    %c0_42 = arith.constant 0 : index
    %101 = vector.load %arg1[%c472, %c0_42] : memref<744x256xf32, #tpu.memory_space<vmem>>, vector<128x16xf32>
    %cst_43 = arith.constant dense<0.000000e+00> : vector<2x16xf32>
    %102 = tpu.matmul %100, %101, %cst_43 {dimension_numbers = #tpu.dot_dimension_numbers<[1], [0], [0], [1], [0, 0, 1, 1], [], []>} : vector<2x128xf32>, vector<128x16xf32>, vector<2x16xf32> -> vector<2x16xf32>
    %c600 = arith.constant 600 : index
    %c0_44 = arith.constant 0 : index
    %103 = vector.load %arg1[%c600, %c0_44] : memref<744x256xf32, #tpu.memory_space<vmem>>, vector<1x16xf32>
    %104 = vector.broadcast %103 : vector<1x16xf32> to vector<2x16xf32>
    %105 = arith.addf %102, %104 : vector<2x16xf32>
    %106 = vector.broadcast %60 : vector<1x128xf32> to vector<5x128xf32>
    %107 = arith.mulf %14, %106 : vector<5x128xf32>
    %c608 = arith.constant 608 : index
    %c0_45 = arith.constant 0 : index
    %108 = vector.load %arg1[%c608, %c0_45] : memref<744x256xf32, #tpu.memory_space<vmem>>, vector<128x5xf32>
    %cst_46 = arith.constant dense<0.000000e+00> : vector<5x5xf32>
    %109 = tpu.matmul %107, %108, %cst_46 {dimension_numbers = #tpu.dot_dimension_numbers<[1], [0], [0], [1], [0, 0, 1, 1], [], []>} : vector<5x128xf32>, vector<128x5xf32>, vector<5x5xf32> -> vector<5x5xf32>
    %c736 = arith.constant 736 : index
    %c0_47 = arith.constant 0 : index
    %110 = vector.load %arg1[%c736, %c0_47] : memref<744x256xf32, #tpu.memory_space<vmem>>, vector<1x5xf32>
    %111 = vector.broadcast %110 : vector<1x5xf32> to vector<5x5xf32>
    %112 = arith.addf %109, %111 : vector<5x5xf32>
    %113 = vector.extract_strided_slice %98 {offsets = [0, 0], sizes = [2, 16], strides = [1, 1]} : vector<5x16xf32> to vector<2x16xf32>
    %114 = vector.extract_strided_slice %98 {offsets = [2, 0], sizes = [3, 16], strides = [1, 1]} : vector<5x16xf32> to vector<3x16xf32>
    %115 = arith.mulf %105, %113 : vector<2x16xf32>
    %cst_48 = arith.constant dense<0.000000e+00> : vector<2xf32>
    %116 = vector.multi_reduction <add>, %115, %cst_48 [1] : vector<2x16xf32> to vector<2xf32>
    %117 = vector.shape_cast %116 : vector<2xf32> to vector<2x1xf32>
    %cst_49 = arith.constant dense<0.000000e+00> : vector<2x3xf32>
    %118 = tpu.matmul %105, %114, %cst_49 {dimension_numbers = #tpu.dot_dimension_numbers<[1], [1], [0], [0], [0, 0, 1, 0], [], []>} : vector<2x16xf32>, vector<3x16xf32>, vector<2x3xf32> -> vector<2x3xf32>
    %119 = arith.mulf %105, %105 : vector<2x16xf32>
    %cst_50 = arith.constant dense<0.000000e+00> : vector<2xf32>
    %120 = vector.multi_reduction <add>, %119, %cst_50 [1] : vector<2x16xf32> to vector<2xf32>
    %121 = vector.shape_cast %120 : vector<2xf32> to vector<2x1xf32>
    %cst_51 = arith.constant 1.000000e-16 : f32
    %122 = vector.broadcast %cst_51 : f32 to vector<2x1xf32>
    %123 = arith.maximumf %121, %122 : vector<2x1xf32>
    %124 = arith.mulf %113, %113 : vector<2x16xf32>
    %cst_52 = arith.constant dense<0.000000e+00> : vector<2xf32>
    %125 = vector.multi_reduction <add>, %124, %cst_52 [1] : vector<2x16xf32> to vector<2xf32>
    %126 = vector.shape_cast %125 : vector<2xf32> to vector<2x1xf32>
    %cst_53 = arith.constant 1.000000e-16 : f32
    %127 = vector.broadcast %cst_53 : f32 to vector<2x1xf32>
    %128 = arith.maximumf %126, %127 : vector<2x1xf32>
    %cst_54 = arith.constant 1.000000e+00 : f32
    %129 = vector.broadcast %cst_54 : f32 to vector<1x16xf32>
    %130 = arith.mulf %114, %114 : vector<3x16xf32>
    %cst_55 = arith.constant dense<0.000000e+00> : vector<1x3xf32>
    %131 = tpu.matmul %129, %130, %cst_55 {dimension_numbers = #tpu.dot_dimension_numbers<[1], [1], [0], [0], [0, 0, 1, 0], [], []>} : vector<1x16xf32>, vector<3x16xf32>, vector<1x3xf32> -> vector<1x3xf32>
    %cst_56 = arith.constant 1.000000e-16 : f32
    %132 = vector.broadcast %cst_56 : f32 to vector<1x3xf32>
    %133 = arith.maximumf %131, %132 : vector<1x3xf32>
    %134 = tpu.concatenate %117, %118 in 1 : vector<2x1xf32>, vector<2x3xf32> -> vector<2x4xf32>
    %135 = vector.shape_cast %133 : vector<1x3xf32> to vector<1x3xf32>
    %136 = vector.broadcast %135 : vector<1x3xf32> to vector<2x3xf32>
    %137 = tpu.concatenate %128, %136 in 1 : vector<2x1xf32>, vector<2x3xf32> -> vector<2x4xf32>
    %138 = vector.broadcast %123 : vector<2x1xf32> to vector<2x4xf32>
    %139 = arith.mulf %138, %137 : vector<2x4xf32>
    %140 = math.rsqrt %139 : vector<2x4xf32>
    %141 = arith.mulf %134, %140 : vector<2x4xf32>
    %cst_57 = arith.constant 0.000000e+00 : f32
    %142 = vector.broadcast %cst_57 : f32 to vector<2x124xf32>
    %143 = tpu.concatenate %141, %142 in 1 : vector<2x4xf32>, vector<2x124xf32> -> vector<2x128xf32>
    %cst_58 = arith.constant 0.000000e+00 : f32
    %144 = vector.broadcast %cst_58 : f32 to vector<6x128xf32>
    %145 = tpu.concatenate %143, %144 in 0 : vector<2x128xf32>, vector<6x128xf32> -> vector<8x128xf32>
    %cst_59 = arith.constant 0.000000e+00 : f32
    %146 = vector.broadcast %cst_59 : f32 to vector<5x123xf32>
    %147 = tpu.concatenate %112, %146 in 1 : vector<5x5xf32>, vector<5x123xf32> -> vector<5x128xf32>
    %cst_60 = arith.constant 0.000000e+00 : f32
    %148 = vector.broadcast %cst_60 : f32 to vector<3x128xf32>
    %149 = tpu.concatenate %147, %148 in 0 : vector<5x128xf32>, vector<3x128xf32> -> vector<8x128xf32>
    %150 = tpu.concatenate %145, %149 in 0 : vector<8x128xf32>, vector<8x128xf32> -> vector<16x128xf32>
    %c0_61 = arith.constant 0 : index
    %c0_62 = arith.constant 0 : index
    %151 = vector.load %arg2[%c0_61, %c0_62] : memref<16x128xf32, #tpu.memory_space<vmem>>, vector<16x128xf32>
    tpu.vector_store %arg2[%c0_61, %c0_62], %150 {strides = array<i32>} : memref<16x128xf32, #tpu.memory_space<vmem>>, vector<16x128xf32>,
    return
  }
}

</mosaic_0001>

<bundles_post_ra>
// kernel: vakm_forward.1
= control target key start
LH: loop header
LB: loop body
LE: loop exit
PB: predicated region body
PF: predicated region fallthrough
CT: control target
= control target key end

     0   :  { %vm57_vm0 = vcmask 203776   ;;  %s2704_s13 = smov 1   ;;  %s2705_s14 = smov 127   ;;  %v13_v2 = vlaneseq  ;;  %v2706_v8 = vmov 0.0   ;;  %vm25_vm4 = vcmask 1044480   ;;  %s3389_s0 = inlined_call_operand.vmem [shape: f32[8,256], index: 0, kind: input, shape index: {}]   ;;  %s3390_s1 = inlined_call_operand.vmem [shape: f32[744,256], index: 1, kind: input, shape index: {}]   ;;  %s3391_s2 = inlined_call_operand.vmem [shape: f32[16,128], index: 2, kind: output, shape index: {}]  }
   0x1   :  { %v11_v0 = vld [vmem:[%s3389_s0] sm:$0xff]  ;;  %vm70_vm5 = vcmask 1040384   ;;  %vm2707_vm6 = vmmov 1   ;;  %v50_v22 = vld [vmem:[%s3390_s1 + $0x10] sm:$0xff]  ;;  %vm187_vm8 = vcmask 793600   ;;  %v2708_v61 = vmov 0.0|0.0  }
   0x2   :  { %v49_v1 = vld [vmem:[%s3390_s1] sm:$0xff]  ;;  %53 = vrot.lane.b32.xlu0 %v11_v0, %s2704_s13  ;;  %v2735_v3 = vshrl.u32 %v13_v2, 7  ;;  %v2738_v5 = vand.u32 127, %v13_v2  ;;  %vm2750_vm7 = vmpackc.low %vm70_vm5, %vm2707_vm6  ;;  %v52_v24 = vld [vmem:[%s3390_s1 + $0x30] sm:$0xff]  ;;  %2245 = vmatprep.subr.bf16.mxu0 %v2708_v61  ;;  %vm367_vm9 = vcmask 531456   ;;  %vm2709_vm10 = vmmov 0  }
   0x3   :  { %1942 = vmatprep.mubr.msk.f32.mxu1 %vm57_vm0, %v49_v1  ;;  %v51_v23 = vld [vmem:[%s3390_s1 + $0x20] sm:$0xff]  ;;  %v164_v54 = vld [vmem:[%s3390_s1 + $0x50] sm:$0xff]  ;;  %vm41_vm14 = vcmask 1041408   ;;  %vm1535_vm15 = vcmask 123904  }
   0x4   :  { %v17_v4 = vmul.u32 18, %v2735_v3  ;;  %v163_v37 = vld [vmem:[%s3390_s1 + $0x40] sm:$0xff]  ;;  %v166_v56 = vld [vmem:[%s3390_s1 + $0x70] sm:$0xff] }
   0x5   :  { %v165_v55 = vld [vmem:[%s3390_s1 + $0x60] sm:$0xff]  ;;  %v168_v58 = vld [vmem:[%s3390_s1 + $0x90] sm:$0xff] }
   0x6   :  { %55 = vrot.lane.b32.xlu0 %v11_v0, %s2705_s14  ;;  %v18_v6 = vadd.s32 1, %v17_v4  ;;  %v20_v7 = vadd.s32 16, %v17_v4  ;;  %v167_v57 = vld [vmem:[%s3390_s1 + $0x80] sm:$0xff]  ;;  %v170_v60 = vld [vmem:[%s3390_s1 + $0xb0] sm:$0xff] }
   0x7   :  { %v169_v59 = vld [vmem:[%s3390_s1 + $0xa0] sm:$0xff] }
   0x8   :  { %vm19_vm1 = vcmp.ge.s32.totalorder %v2738_v5, %v18_v6  ;;  %vm21_vm2 = vcmp.le.s32.totalorder %v2738_v5, %v20_v7 }
   0x9   :  { %vm22_vm3 = vmand %vm19_vm1, %vm21_vm2  ;;  %vm1541_vm1 = vcmask 130048   ;;  %vm1709_vm2 = vcmask 7168  }
   0xa   :  { %v2743_v9 = vsel %vm22_vm3, 1.0, %v2706_v8  ;;  %vm1723_vm3 = vcmask 31744  }
   0xb   :  { %v26_v10 = vsel %vm25_vm4, %v2743_v9, -inf }
   0xc   :  { %v27_v11 = vrot.slane %v26_v10, 4 }
   0xe   :  { %v28_v12 = vmax.f32 %v26_v10, %v27_v11 }
  0x10   :  { %v29_v13 = vrot.slane %v28_v12, 2 }
  0x12   :  { %v30_v14 = vmax.f32 %v28_v12, %v29_v13 }
  0x14   :  { %v31_v15 = vrot.slane %v30_v14, 1 }
  0x16   :  { %v2747_v18 = vmax.f32 %v30_v14, %v31_v15 }
  0x74   :  { %v54_v16 = vpop.permute.xlu0 %53 }
  0x75   :  { %v2211_v17 = vpack.c.bf16 %v11_v0, %v54_v16 }
  0x77   :  { %2212 = vmatprep.subr.bf16.mxu1 %v2211_v17 }
  0x78   :  { %2214 = vmatpush3.bf16.msra.mxu1 %v2211_v17  ;;  %v56_v19 = vpop.permute.xlu0 %55 }
  0x79   :  { %v2215_v21 = vpack.c.bf16 %v2747_v18, %v56_v19 }
  0x7b   :  { %2217 = vmatprep.subr.msk.bf16.mxu1 %vm2750_vm7, %v2215_v21 }
  0x7c   :  { %2220 = vmatpush3.bf16.msk.msra.mxu1 %vm2750_vm7, %v2215_v21 }
  0x7f   :  { %1943 = vmatmul.mubr.msk.f32.vlgmr.msra.gmra.mrb[0].mxu1 %vm57_vm0, %v50_v22 }
  0x80   :  { %1945 = vmatprep.mubr.msk.f32.mxu1 %vm57_vm0, %v51_v23 }
  0x83   :  { %1946 = vmatmul.mubr.msk.f32.gmra.mrb[2].mxu1 %vm57_vm0, %v52_v24 }
  0x84   :  { %1974 = vmatprep.mubr.msk.f32.mxu1 %vm187_vm8, %v163_v37 }
 0x152   :  { %v1944_v25 = vpop.f32.mrb[0].mxu1 }
 0x153   :  { %v160_v26 = vmul.f32 %v1944_v25, %v2747_v18  ;;  %v140_v27 = vpop.f32.mrb[1].mxu1 }
 0x154   :  { %v159_v28 = vmul.f32 %v140_v27, %v2747_v18 }
 0x156   :  { %v1947_v29 = vpop.f32.mrb[2].mxu1  ;;  %v2512_v30 = vpack.i.bf16 %v160_v26, %v159_v28  ;;  %v2229_v31 = vpack.c.bf16 %v160_v26, %v159_v28  ;;  %v326_v28 = vld [vmem:[%s3390_s1 + $0xc8] sm:$0xff] }
 0x157   :  { %v162_v32 = vmul.f32 %v1947_v29, %v2747_v18  ;;  %v150_v33 = vpop.f32.mrb[3].mxu1  ;;  %1752 = vmatprep.mubr.msk.f32.mxu0 %vm367_vm9, %v326_v28  ;;  %v33_v28 = vmul.u32 26, %v2735_v3 }
 0x158   :  { %v161_v34 = vmul.f32 %v150_v33, %v2747_v18  ;;  %2513 = vrot.lane.b32.xlu0 %v2512_v30, %s2705_s14  ;;  %2503 = vrot.lane.b32.xlu1 %v2512_v30, %s2704_s13 }
 0x15a   :  { %v2507_v35 = vpack.i.bf16 %v162_v32, %v161_v34  ;;  %v2233_v36 = vpack.c.bf16 %v162_v32, %v161_v34 }
 0x15c   :  { %2508 = vrot.lane.b32.xlu1 %v2507_v35, %s2704_s13 }
 0x160   :  { %2518 = vrot.lane.b32.xlu1 %v2507_v35, %s2705_s14 }
 0x1ca   :  { %v2504_v38 = vpop.permute.xlu1 %2503  ;;  %v2514_v46 = vpop.permute.xlu0 %2513 }
 0x1cb   :  { %v2506_v39 = vunpack.i.h.bf16 %v2504_v38  ;;  %v2505_v40 = vunpack.i.l.bf16 %v2504_v38  ;;  %v2516_v47 = vunpack.i.h.bf16 %v2514_v46  ;;  %v2515_v48 = vunpack.i.l.bf16 %v2514_v46 }
 0x1cd   :  { %v2221_v41 = vpack.c.bf16 %v2506_v39, %v2505_v40  ;;  %v2237_v50 = vpack.c.bf16 %v2516_v47, %v2515_v48 }
 0x1ce   :  { %v2509_v42 = vpop.permute.xlu1 %2508 }
 0x1cf   :  { %v2511_v43 = vunpack.i.h.bf16 %v2509_v42  ;;  %v2510_v44 = vunpack.i.l.bf16 %v2509_v42  ;;  %2222 = vmatprep.subr.bf16.mxu1 %v2221_v41 }
 0x1d0   :  { %2224 = vmatpush3.bf16.msra.mxu1 %v2221_v41 }
 0x1d1   :  { %v2225_v45 = vpack.c.bf16 %v2511_v43, %v2510_v44 }
 0x1d2   :  { %v2519_v49 = vpop.permute.xlu1 %2518 }
 0x1d3   :  { %2226 = vmatprep.subr.bf16.mxu1 %v2225_v45  ;;  %v2521_v51 = vunpack.i.h.bf16 %v2519_v49  ;;  %v2520_v52 = vunpack.i.l.bf16 %v2519_v49 }
 0x1d4   :  { %2228 = vmatpush3.bf16.msra.mxu1 %v2225_v45 }
 0x1d5   :  { %2230 = vmatprep.subr.bf16.mxu1 %v2229_v31  ;;  %v2241_v53 = vpack.c.bf16 %v2521_v51, %v2520_v52 }
 0x1d8   :  { %2232 = vmatpush3.bf16.msra.mxu1 %v2229_v31 }
 0x1d9   :  { %2234 = vmatprep.subr.bf16.mxu1 %v2233_v36 }
 0x1dc   :  { %2236 = vmatpush3.bf16.msra.mxu1 %v2233_v36 }
 0x1dd   :  { %2238 = vmatprep.subr.bf16.mxu1 %v2237_v50 }
 0x1e0   :  { %2240 = vmatpush3.bf16.msra.mxu1 %v2237_v50 }
 0x1e1   :  { %2242 = vmatprep.subr.bf16.mxu1 %v2241_v53 }
 0x1e4   :  { %2244 = vmatpush3.bf16.msra.mxu1 %v2241_v53 }
 0x1e5   :  { %1972 = vmatprep.subr.msk.mxu1 %vm70_vm5, %v2747_v18 }
 0x1e8   :  { %1973 = vmatpush3.msk.msra.mxu1 %vm70_vm5, %v2747_v18 }
 0x1e9   :  { %1975 = vmatmul.mubr.msk.f32.vlgmr.msra.gmra.mrb[4].mxu1 %vm187_vm8, %v164_v54  ;;  %2281 = vmatprep.subr.bf16.mxu1 %v2708_v61 }
 0x1ea   :  { %1977 = vmatprep.mubr.msk.f32.mxu1 %vm187_vm8, %v165_v55 }
 0x1ed   :  { %1978 = vmatmul.mubr.msk.f32.gmra.mrb[6].mxu1 %vm187_vm8, %v166_v56 }
 0x1ee   :  { %1980 = vmatprep.mubr.msk.f32.mxu1 %vm187_vm8, %v167_v57 }
 0x1f1   :  { %1981 = vmatmul.mubr.msk.f32.gmra.mrb[8].mxu1 %vm187_vm8, %v168_v58 }
 0x1f2   :  { %1983 = vmatprep.mubr.msk.f32.mxu1 %vm187_vm8, %v169_v59 }
 0x1f5   :  { %1984 = vmatmul.mubr.msk.f32.gmra.mrb[10].mxu1 %vm187_vm8, %v170_v60 }
 0x1f6   :  { %2012 = vmatprep.mubr.msk.f32.mxu1 %vm2709_vm10, %v2706_v8 }
 0x2bc   :  { %v1976_v62 = vpop.f32.mrb[4].mxu1 }
 0x2bd   :  { %v318_v63 = vmul.f32 %v1976_v62, %v2747_v18  ;;  %v278_v0 = vpop.f32.mrb[5].mxu1  ;;  %v325_v62 = vld [vmem:[%s3390_s1 + $0xc0] sm:$0xff] }
 0x2be   :  { %v317_v1 = vmul.f32 %v278_v0, %v2747_v18  ;;  %v327_v0 = vld [vmem:[%s3390_s1 + $0xd0] sm:$0xff] }
 0x2c0   :  { %v1979_v2 = vpop.f32.mrb[6].mxu1  ;;  %v2522_v4 = vpack.i.bf16 %v318_v63, %v317_v1  ;;  %v2258_v6 = vpack.c.bf16 %v318_v63, %v317_v1  ;;  %v328_v63 = vld [vmem:[%s3390_s1 + $0xd8] sm:$0xff]  ;;  %v330_v1 = vld [vmem:[%s3390_s1 + $0xe8] sm:$0xff] }
 0x2c1   :  { %v320_v7 = vmul.f32 %v1979_v2, %v2747_v18  ;;  %v288_v10 = vpop.f32.mrb[7].mxu1  ;;  %v329_v2 = vld [vmem:[%s3390_s1 + $0xe0] sm:$0xff] }
 0x2c2   :  { %v319_v11 = vmul.f32 %v288_v10, %v2747_v18  ;;  %2523 = vrot.lane.b32.xlu0 %v2522_v4, %s2704_s13 }
 0x2c4   :  { %v1982_v12 = vpop.f32.mrb[8].mxu1  ;;  %v2527_v13 = vpack.i.bf16 %v320_v7, %v319_v11  ;;  %v2261_v14 = vpack.c.bf16 %v320_v7, %v319_v11 }
 0x2c5   :  { %v322_v15 = vmul.f32 %v1982_v12, %v2747_v18  ;;  %v298_v16 = vpop.f32.mrb[9].mxu1 }
 0x2c6   :  { %v321_v17 = vmul.f32 %v298_v16, %v2747_v18  ;;  %2528 = vrot.lane.b32.xlu1 %v2527_v13, %s2704_s13 }
 0x2c8   :  { %v1985_v19 = vpop.f32.mrb[10].mxu1  ;;  %v2532_v21 = vpack.i.bf16 %v322_v15, %v321_v17  ;;  %v2264_v22 = vpack.c.bf16 %v322_v15, %v321_v17 }
 0x2c9   :  { %v324_v23 = vmul.f32 %v1985_v19, %v2747_v18  ;;  %v308_v24 = vpop.f32.mrb[11].mxu1 }
 0x2ca   :  { %v323_v25 = vmul.f32 %v308_v24, %v2747_v18  ;;  %2533 = vrot.lane.b32.xlu0 %v2532_v21, %s2704_s13 }
 0x2cc   :  { %v2537_v26 = vpack.i.bf16 %v324_v23, %v323_v25  ;;  %v2267_v27 = vpack.c.bf16 %v324_v23, %v323_v25  ;;  %v12_v25 = vld [vmem:[%s3389_s0 + $0x8] sm:$0xff] }
 0x2ce   :  { %2543 = vrot.lane.b32.xlu0 %v2522_v4, %s2705_s14  ;;  %2538 = vrot.lane.b32.xlu1 %v2537_v26, %s2704_s13  ;;  %v332_v4 = vld [vmem:[%s3390_s1 + $0xf8] sm:$0xff] }
 0x2d2   :  { %2553 = vrot.lane.b32.xlu0 %v2532_v21, %s2705_s14  ;;  %2548 = vrot.lane.b32.xlu1 %v2527_v13, %s2705_s14 }
 0x2d6   :  { %2558 = vrot.lane.b32.xlu1 %v2537_v26, %s2705_s14 }
 0x334   :  { %v2524_v29 = vpop.permute.xlu0 %2523 }
 0x335   :  { %v2526_v30 = vunpack.i.h.bf16 %v2524_v29  ;;  %v2525_v31 = vunpack.i.l.bf16 %v2524_v29  ;;  %v34_v29 = vadd.s32 1, %v33_v28 }
 0x337   :  { %v2246_v32 = vpack.c.bf16 %v2526_v30, %v2525_v31  ;;  %v36_v30 = vadd.s32 24, %v33_v28  ;;  %vm35_vm11 = vcmp.ge.s32.totalorder %v2738_v5, %v34_v29 }
 0x338   :  { %v2529_v33 = vpop.permute.xlu1 %2528 }
 0x339   :  { %v2531_v34 = vunpack.i.h.bf16 %v2529_v33  ;;  %v2530_v35 = vunpack.i.l.bf16 %v2529_v33  ;;  %2247 = vmatpush1.bf16.msra.mxu0 %v2246_v32  ;;  %vm37_vm12 = vcmp.le.s32.totalorder %v2738_v5, %v36_v30 }
 0x33a   :  { %2248 = vmatprep.subr.bf16.mxu0 %v2708_v61  ;;  %vm38_vm13 = vmand %vm35_vm11, %vm37_vm12 }
 0x33b   :  { %v2249_v36 = vpack.c.bf16 %v2531_v34, %v2530_v35  ;;  %v2894_v34 = vsel %vm38_vm13, 1.0, %v2706_v8 }
 0x33c   :  { %v2534_v37 = vpop.permute.xlu0 %2533 }
 0x33d   :  { %v2536_v38 = vunpack.i.h.bf16 %v2534_v37  ;;  %v2535_v39 = vunpack.i.l.bf16 %v2534_v37  ;;  %2250 = vmatpush1.bf16.msra.mxu0 %v2249_v36  ;;  %v42_v36 = vsel %vm41_vm14, %v2894_v34, -inf }
 0x33e   :  { %2251 = vmatprep.subr.bf16.mxu0 %v2708_v61  ;;  %v43_v37 = vrot.slane %v42_v36, 4 }
 0x33f   :  { %v2252_v40 = vpack.c.bf16 %v2536_v38, %v2535_v39 }
 0x340   :  { %v2539_v41 = vpop.permute.xlu1 %2538  ;;  %v2544_v45 = vpop.permute.xlu0 %2543 }
 0x341   :  { %v2541_v42 = vunpack.i.h.bf16 %v2539_v41  ;;  %v2540_v43 = vunpack.i.l.bf16 %v2539_v41  ;;  %2253 = vmatpush1.bf16.msra.mxu0 %v2252_v40  ;;  %v2546_v46 = vunpack.i.h.bf16 %v2544_v45  ;;  %v2545_v47 = vunpack.i.l.bf16 %v2544_v45 }
 0x342   :  { %2254 = vmatprep.subr.bf16.mxu0 %v2708_v61  ;;  %v44_v41 = vmax.f32 %v42_v36, %v43_v37 }
 0x343   :  { %v2255_v44 = vpack.c.bf16 %v2541_v42, %v2540_v43  ;;  %v2270_v49 = vpack.c.bf16 %v2546_v46, %v2545_v47 }
 0x344   :  { %v2549_v48 = vpop.permute.xlu1 %2548  ;;  %v2554_v52 = vpop.permute.xlu0 %2553  ;;  %v45_v42 = vrot.slane %v44_v41, 2 }
 0x345   :  { %2256 = vmatpush1.bf16.msra.mxu0 %v2255_v44  ;;  %v2551_v50 = vunpack.i.h.bf16 %v2549_v48  ;;  %v2550_v51 = vunpack.i.l.bf16 %v2549_v48  ;;  %v2556_v53 = vunpack.i.h.bf16 %v2554_v52  ;;  %v2555_v54 = vunpack.i.l.bf16 %v2554_v52 }
 0x346   :  { %2257 = vmatprep.subr.bf16.mxu0 %v2708_v61  ;;  %v46_v46 = vmax.f32 %v44_v41, %v45_v42  ;;  %v685_v41 = vld [vmem:[%s3390_s1 + $0x1a0] sm:$0xff]  ;;  %v686_v42 = vld [vmem:[%s3390_s1 + $0x1b0] sm:$0xff] }
 0x347   :  { %v2273_v55 = vpack.c.bf16 %v2551_v50, %v2550_v51  ;;  %v2276_v57 = vpack.c.bf16 %v2556_v53, %v2555_v54 }
 0x348   :  { %v2559_v56 = vpop.permute.xlu1 %2558  ;;  %v47_v51 = vrot.slane %v46_v46, 1 }
 0x349   :  { %2259 = vmatpush1.bf16.msra.mxu0 %v2258_v6  ;;  %v2561_v58 = vunpack.i.h.bf16 %v2559_v56  ;;  %v2560_v59 = vunpack.i.l.bf16 %v2559_v56  ;;  %v331_v6 = vld [vmem:[%s3390_s1 + $0xf0] sm:$0xff] }
 0x34a   :  { %2260 = vmatprep.subr.bf16.mxu0 %v2708_v61  ;;  %v2903_v54 = vmax.f32 %v46_v46, %v47_v51 }
 0x34b   :  { %v2279_v60 = vpack.c.bf16 %v2561_v58, %v2560_v59  ;;  %v569_v59 = vld [vmem:[%s3390_s1 + $0x120] sm:$0xff] }
 0x34d   :  { %2262 = vmatpush1.bf16.msra.mxu0 %v2261_v14 }
 0x34e   :  { %2263 = vmatprep.subr.bf16.mxu0 %v2708_v61 }
 0x351   :  { %2265 = vmatpush1.bf16.msra.mxu0 %v2264_v22 }
 0x352   :  { %2266 = vmatprep.subr.bf16.mxu0 %v2708_v61 }
 0x355   :  { %2268 = vmatpush1.bf16.msra.mxu0 %v2267_v27 }
 0x356   :  { %2269 = vmatprep.subr.bf16.mxu0 %v2708_v61 }
 0x359   :  { %2271 = vmatpush1.bf16.msra.mxu0 %v2270_v49 }
 0x35a   :  { %2272 = vmatprep.subr.bf16.mxu0 %v2708_v61 }
 0x35d   :  { %2274 = vmatpush1.bf16.msra.mxu0 %v2273_v55 }
 0x35e   :  { %2275 = vmatprep.subr.bf16.mxu0 %v2708_v61 }
 0x361   :  { %2277 = vmatpush1.bf16.msra.mxu0 %v2276_v57  ;;  %v478_v57 = vld [vmem:[%s3390_s1 + $0x110] ss:$0 sm:$0xff] }
 0x362   :  { %2278 = vmatprep.subr.bf16.mxu0 %v2708_v61 }
 0x365   :  { %2280 = vmatpush1.bf16.msra.mxu0 %v2279_v60  ;;  %v570_v60 = vld [vmem:[%s3390_s1 + $0x130] sm:$0xff] }
 0x366   :  { %431 = vmatprep.subr.mxu0 %v2706_v8 }
 0x369   :  { %1751 = vmatpush1.msk.msra.mxu0 %vm70_vm5, %v2747_v18 }
 0x36a   :  { %448 = vmatmul.mubr.f32.vlgmr.msra.gmra.mrb[0].mxu0 %v325_v62  ;;  %v571_v62 = vld [vmem:[%s3390_s1 + $0x140] sm:$0xff] }
 0x36b   :  { %1753 = vmatprep.mubr.msk.f32.mxu0 %vm367_vm9, %v328_v63  ;;  %v572_v63 = vld [vmem:[%s3390_s1 + $0x150] sm:$0xff] }
 0x36e   :  { %453 = vmatmul.mubr.f32.gmra.mrb[2].mxu0 %v327_v0 }
 0x36f   :  { %1754 = vmatprep.mubr.msk.f32.mxu0 %vm367_vm9, %v330_v1 }
 0x372   :  { %458 = vmatmul.mubr.f32.gmra.mrb[4].mxu0 %v329_v2 }
 0x373   :  { %1755 = vmatprep.mubr.msk.f32.mxu0 %vm367_vm9, %v332_v4 }
 0x376   :  { %463 = vmatmul.mubr.f32.gmra.mrb[6].mxu0 %v331_v6 }
 0x43d   :  { %v449_v7 = vpop.f32.mrb[0].mxu0 }
 0x43e   :  { %v451_v10 = vpop.f32.mrb[1].mxu0  ;;  %v473_v12 = vmul.f32 %v449_v7, %v2747_v18 }
 0x441   :  { %v454_v11 = vpop.f32.mrb[2].mxu0 }
 0x442   :  { %v474_v13 = vmul.f32 %v454_v11, %v2747_v18  ;;  %v456_v14 = vpop.f32.mrb[3].mxu0 }
 0x444   :  { %v2288_v15 = vpack.c.bf16 %v474_v13, %v473_v12  ;;  %v2562_v16 = vpack.i.bf16 %v474_v13, %v473_v12 }
 0x445   :  { %v459_v17 = vpop.f32.mrb[4].mxu0 }
 0x446   :  { %2563 = vrot.lane.b32.xlu0 %v2562_v16, %s2704_s13  ;;  %v461_v19 = vpop.f32.mrb[5].mxu0  ;;  %v475_v22 = vmul.f32 %v459_v17, %v2747_v18  ;;  %v334_v17 = vld [vmem:[%s3390_s1 + $0x108] sm:$0x1] }
 0x447   :  { %v333_v19 = vld [vmem:[%s3390_s1 + $0x100] sm:$0x1]  ;;  %1756 = vmatprep.mubr.msk.f32.mxu0 %vm367_vm9, %v334_v17 }
 0x448   :  { %468 = vmatmul.mubr.f32.gmra.mrb[8].mxu0 %v333_v19 }
 0x449   :  { %v464_v21 = vpop.f32.mrb[6].mxu0 }
 0x44a   :  { %v476_v23 = vmul.f32 %v464_v21, %v2747_v18  ;;  %2573 = vrot.lane.b32.xlu0 %v2562_v16, %s2705_s14  ;;  %v466_v24 = vpop.f32.mrb[7].mxu0  ;;  %v681_v21 = vld [vmem:[%s3390_s1 + $0x160] sm:$0xff] }
 0x44b   :  { %2055 = vmatprep.mubr.msk.f32.mxu0 %vm187_vm8, %v681_v21 }
 0x44c   :  { %v2291_v26 = vpack.c.bf16 %v476_v23, %v475_v22  ;;  %v2567_v27 = vpack.i.bf16 %v476_v23, %v475_v22 }
 0x44e   :  { %2568 = vrot.lane.b32.xlu1 %v2567_v27, %s2704_s13  ;;  %573 = vrot.lane.b32.xlu0 %v12_v25, %s2704_s13 }
 0x452   :  { %2578 = vrot.lane.b32.xlu1 %v2567_v27, %s2705_s14 }
 0x456   :  { %575 = vrot.lane.b32.xlu1 %v12_v25, %s2705_s14 }
 0x4b8   :  { %v2564_v31 = vpop.permute.xlu0 %2563 }
 0x4b9   :  { %v2566_v32 = vunpack.i.h.bf16 %v2564_v31  ;;  %v2565_v33 = vunpack.i.l.bf16 %v2564_v31 }
 0x4bb   :  { %v2282_v35 = vpack.c.bf16 %v2566_v32, %v2565_v33 }
 0x4bc   :  { %v2574_v43 = vpop.permute.xlu0 %2573 }
 0x4bd   :  { %2283 = vmatpush3.bf16.msra.mxu1 %v2282_v35  ;;  %v2576_v44 = vunpack.i.h.bf16 %v2574_v43  ;;  %v2575_v45 = vunpack.i.l.bf16 %v2574_v43  ;;  %v687_v43 = vld [vmem:[%s3390_s1 + $0x1c0] sm:$0xff] }
 0x4be   :  { %2284 = vmatprep.subr.bf16.mxu1 %v2708_v61 }
 0x4bf   :  { %v2294_v48 = vpack.c.bf16 %v2576_v44, %v2575_v45  ;;  %v688_v44 = vld [vmem:[%s3390_s1 + $0x1d0] sm:$0xff] }
 0x4c0   :  { %v2569_v38 = vpop.permute.xlu1 %2568  ;;  %v574_v53 = vpop.permute.xlu0 %573 }
 0x4c1   :  { %v2571_v39 = vunpack.i.h.bf16 %v2569_v38  ;;  %v2570_v40 = vunpack.i.l.bf16 %v2569_v38  ;;  %v2299_v56 = vpack.c.bf16 %v12_v25, %v574_v53 }
 0x4c3   :  { %v2285_v5 = vpack.c.bf16 %v2571_v39, %v2570_v40  ;;  %v682_v39 = vld [vmem:[%s3390_s1 + $0x170] sm:$0xff]  ;;  %v683_v40 = vld [vmem:[%s3390_s1 + $0x180] sm:$0xff] }
 0x4c4   :  { %v2579_v47 = vpop.permute.xlu1 %2578 }
 0x4c5   :  { %2286 = vmatpush3.bf16.msra.mxu1 %v2285_v5  ;;  %v2581_v49 = vunpack.i.h.bf16 %v2579_v47  ;;  %v2580_v50 = vunpack.i.l.bf16 %v2579_v47  ;;  %v684_v5 = vld [vmem:[%s3390_s1 + $0x190] sm:$0xff] }
 0x4c6   :  { %2287 = vmatprep.subr.bf16.mxu1 %v2708_v61 }
 0x4c7   :  { %v2297_v52 = vpack.c.bf16 %v2581_v49, %v2580_v50 }
 0x4c8   :  { %v576_v55 = vpop.permute.xlu1 %575 }
 0x4c9   :  { %2289 = vmatpush3.bf16.msra.mxu1 %v2288_v15  ;;  %v2303_v58 = vpack.c.bf16 %v2903_v54, %v576_v55 }
 0x4ca   :  { %2290 = vmatprep.subr.bf16.mxu1 %v2708_v61 }
 0x4cd   :  { %2292 = vmatpush3.bf16.msra.mxu1 %v2291_v26 }
 0x4ce   :  { %2293 = vmatprep.subr.bf16.mxu1 %v2708_v61 }
 0x4d1   :  { %2295 = vmatpush3.bf16.msra.mxu1 %v2294_v48 }
 0x4d2   :  { %2296 = vmatprep.subr.bf16.mxu1 %v2708_v61 }
 0x4d5   :  { %2298 = vmatpush3.bf16.msra.mxu1 %v2297_v52 }
 0x4d6   :  { %2010 = vmatprep.subr.mxu1 %v2706_v8 }
 0x4d9   :  { %2011 = vmatpush3.msk.msra.mxu1 %vm70_vm5, %v2747_v18 }
 0x4da   :  { %2013 = vmatmul.mubr.msk.f32.vlgmr.msra.gmra.mrb[12].mxu1 %vm187_vm8, %v478_v57  ;;  %2300 = vmatprep.subr.bf16.mxu1 %v2299_v56 }
 0x4db   :  { %2302 = vmatpush3.bf16.msra.mxu1 %v2299_v56  ;;  %2023 = vmatprep.mubr.msk.f32.mxu1 %vm57_vm0, %v569_v59 }
 0x4dc   :  { %2305 = vmatprep.subr.msk.bf16.mxu1 %vm2750_vm7, %v2303_v58 }
 0x4df   :  { %2308 = vmatpush3.bf16.msk.msra.mxu1 %vm2750_vm7, %v2303_v58 }
 0x4e0   :  { %2333 = vmatprep.subr.bf16.mxu1 %v2708_v61 }
 0x4e2   :  { %2024 = vmatmul.mubr.msk.f32.vlgmr.msra.gmra.mrb[14].mxu1 %vm57_vm0, %v570_v60 }
 0x4e3   :  { %2026 = vmatprep.mubr.msk.f32.mxu1 %vm57_vm0, %v571_v62 }
 0x4e6   :  { %2027 = vmatmul.mubr.msk.f32.gmra.mrb[16].mxu1 %vm57_vm0, %v572_v63  ;;  %vm1726_vm0 = vcmask 39936  }
 0x51b   :  { %v2988_v45 = vpop.f32.mrb[8].mxu0 }
 0x51c   :  { %v471_v46 = vpop.f32.mrb[9].mxu0 }
 0x5ad   :  { %v2934_v20 = vpop.f32.mrb[12].mxu1 }
 0x5ae   :  { %v2014_v0 = vpop.f32.mrb[13].mxu1 }
 0x5b5   :  { %v2025_v1 = vpop.f32.mrb[14].mxu1 }
 0x5b6   :  { %v678_v2 = vmul.f32 %v2025_v1, %v2903_v54  ;;  %v658_v4 = vpop.f32.mrb[15].mxu1 }
 0x5b7   :  { %v677_v6 = vmul.f32 %v658_v4, %v2903_v54 }
 0x5b9   :  { %v2028_v7 = vpop.f32.mrb[16].mxu1  ;;  %v2582_v10 = vpack.i.bf16 %v678_v2, %v677_v6  ;;  %v2317_v11 = vpack.c.bf16 %v678_v2, %v677_v6 }
 0x5ba   :  { %v680_v12 = vmul.f32 %v2028_v7, %v2903_v54  ;;  %v668_v13 = vpop.f32.mrb[17].mxu1 }
 0x5bb   :  { %v679_v14 = vmul.f32 %v668_v13, %v2903_v54  ;;  %2583 = vrot.lane.b32.xlu0 %v2582_v10, %s2704_s13  ;;  %v843_v13 = vld [vmem:[%s3390_s1 + $0x1e8] sm:$0xff] }
 0x5bc   :  { %1774 = vmatprep.mubr.msk.f32.mxu1 %vm367_vm9, %v843_v13 }
 0x5bd   :  { %v2587_v15 = vpack.i.bf16 %v680_v12, %v679_v14  ;;  %v2321_v16 = vpack.c.bf16 %v680_v12, %v679_v14 }
 0x5bf   :  { %2593 = vrot.lane.b32.xlu0 %v2582_v10, %s2705_s14  ;;  %2588 = vrot.lane.b32.xlu1 %v2587_v15, %s2704_s13 }
 0x5c3   :  { %2598 = vrot.lane.b32.xlu1 %v2587_v15, %s2705_s14 }
 0x62d   :  { %v2584_v22 = vpop.permute.xlu0 %2583 }
 0x62e   :  { %v2586_v23 = vunpack.i.h.bf16 %v2584_v22  ;;  %v2585_v24 = vunpack.i.l.bf16 %v2584_v22 }
 0x630   :  { %v2309_v25 = vpack.c.bf16 %v2586_v23, %v2585_v24 }
 0x631   :  { %v2589_v26 = vpop.permute.xlu1 %2588  ;;  %v2594_v30 = vpop.permute.xlu0 %2593 }
 0x632   :  { %v2591_v27 = vunpack.i.h.bf16 %v2589_v26  ;;  %v2590_v28 = vunpack.i.l.bf16 %v2589_v26  ;;  %2310 = vmatprep.subr.bf16.mxu0 %v2309_v25  ;;  %v2596_v31 = vunpack.i.h.bf16 %v2594_v30  ;;  %v2595_v32 = vunpack.i.l.bf16 %v2594_v30 }
 0x633   :  { %2312 = vmatpush3.bf16.msra.mxu0 %v2309_v25 }
 0x634   :  { %v2313_v29 = vpack.c.bf16 %v2591_v27, %v2590_v28  ;;  %v2325_v35 = vpack.c.bf16 %v2596_v31, %v2595_v32 }
 0x635   :  { %v2599_v33 = vpop.permute.xlu1 %2598 }
 0x636   :  { %2314 = vmatprep.subr.bf16.mxu0 %v2313_v29  ;;  %v2601_v36 = vunpack.i.h.bf16 %v2599_v33  ;;  %v2600_v37 = vunpack.i.l.bf16 %v2599_v33 }
 0x637   :  { %2316 = vmatpush3.bf16.msra.mxu0 %v2313_v29 }
 0x638   :  { %2318 = vmatprep.subr.bf16.mxu0 %v2317_v11  ;;  %v2329_v38 = vpack.c.bf16 %v2601_v36, %v2600_v37 }
 0x63b   :  { %2320 = vmatpush3.bf16.msra.mxu0 %v2317_v11 }
 0x63c   :  { %2322 = vmatprep.subr.bf16.mxu0 %v2321_v16 }
 0x63f   :  { %2324 = vmatpush3.bf16.msra.mxu0 %v2321_v16 }
 0x640   :  { %2326 = vmatprep.subr.bf16.mxu0 %v2325_v35 }
 0x643   :  { %2328 = vmatpush3.bf16.msra.mxu0 %v2325_v35 }
 0x644   :  { %2330 = vmatprep.subr.bf16.mxu0 %v2329_v38 }
 0x647   :  { %2332 = vmatpush3.bf16.msra.mxu0 %v2329_v38 }
 0x648   :  { %2053 = vmatprep.subr.msk.mxu0 %vm70_vm5, %v2903_v54 }
 0x64b   :  { %2054 = vmatpush3.msk.msra.mxu0 %vm70_vm5, %v2903_v54 }
 0x64c   :  { %2056 = vmatmul.mubr.msk.f32.vlgmr.msra.gmra.mrb[10].mxu0 %vm187_vm8, %v682_v39  ;;  %2369 = vmatprep.subr.bf16.mxu0 %v2708_v61 }
 0x64d   :  { %2058 = vmatprep.mubr.msk.f32.mxu0 %vm187_vm8, %v683_v40 }
 0x650   :  { %2059 = vmatmul.mubr.msk.f32.gmra.mrb[12].mxu0 %vm187_vm8, %v684_v5 }
 0x651   :  { %2061 = vmatprep.mubr.msk.f32.mxu0 %vm187_vm8, %v685_v41 }
 0x654   :  { %2062 = vmatmul.mubr.msk.f32.gmra.mrb[14].mxu0 %vm187_vm8, %v686_v42 }
 0x655   :  { %2064 = vmatprep.mubr.msk.f32.mxu0 %vm187_vm8, %v687_v43 }
 0x658   :  { %2065 = vmatmul.mubr.msk.f32.gmra.mrb[16].mxu0 %vm187_vm8, %v688_v44 }
 0x71f   :  { %v2057_v47 = vpop.f32.mrb[10].mxu0 }
 0x720   :  { %v835_v48 = vmul.f32 %v2057_v47, %v2903_v54  ;;  %v795_v49 = vpop.f32.mrb[11].mxu0 }
 0x721   :  { %v834_v50 = vmul.f32 %v795_v49, %v2903_v54  ;;  %v842_v49 = vld [vmem:[%s3390_s1 + $0x1e0] sm:$0xff] }
 0x723   :  { %v2346_v51 = vpack.c.bf16 %v835_v48, %v834_v50  ;;  %v2060_v52 = vpop.f32.mrb[12].mxu0  ;;  %v2602_v53 = vpack.i.bf16 %v835_v48, %v834_v50  ;;  %v845_v50 = vld [vmem:[%s3390_s1 + $0x1f8] sm:$0xff] }
 0x724   :  { %v837_v55 = vmul.f32 %v2060_v52, %v2903_v54  ;;  %v805_v56 = vpop.f32.mrb[13].mxu0  ;;  %v847_v52 = vld [vmem:[%s3390_s1 + $0x208] sm:$0xff] }
 0x725   :  { %v836_v57 = vmul.f32 %v805_v56, %v2903_v54  ;;  %2603 = vrot.lane.b32.xlu0 %v2602_v53, %s2704_s13  ;;  %v848_v56 = vld [vmem:[%s3390_s1 + $0x210] sm:$0xff] }
 0x727   :  { %v2349_v58 = vpack.c.bf16 %v837_v55, %v836_v57  ;;  %v2063_v59 = vpop.f32.mrb[14].mxu0  ;;  %v2607_v60 = vpack.i.bf16 %v837_v55, %v836_v57  ;;  %v849_v55 = vld [vmem:[%s3390_s1 + $0x218] sm:$0xff]  ;;  %v851_v57 = vld [vmem:[%s3390_s1 + $0x228] sm:$0xff] }
 0x728   :  { %v839_v62 = vmul.f32 %v2063_v59, %v2903_v54  ;;  %v815_v63 = vpop.f32.mrb[15].mxu0  ;;  %v853_v59 = vld [vmem:[%s3390_s1 + $0x238] sm:$0xff] }
 0x729   :  { %v838_v0 = vmul.f32 %v815_v63, %v2903_v54  ;;  %2608 = vrot.lane.b32.xlu1 %v2607_v60, %s2704_s13  ;;  %v854_v63 = vld [vmem:[%s3390_s1 + $0x240] sm:$0xff] }
 0x72b   :  { %v2352_v1 = vpack.c.bf16 %v839_v62, %v838_v0  ;;  %v2066_v2 = vpop.f32.mrb[16].mxu0  ;;  %v2612_v4 = vpack.i.bf16 %v839_v62, %v838_v0  ;;  %v855_v62 = vld [vmem:[%s3390_s1 + $0x248] sm:$0xff]  ;;  %v857_v0 = vld [vmem:[%s3390_s1 + $0x258] sm:$0xff] }
 0x72c   :  { %v841_v6 = vmul.f32 %v2066_v2, %v2903_v54  ;;  %v825_v7 = vpop.f32.mrb[17].mxu0 }
 0x72d   :  { %v840_v10 = vmul.f32 %v825_v7, %v2903_v54  ;;  %2613 = vrot.lane.b32.xlu0 %v2612_v4, %s2704_s13 }
 0x72f   :  { %v2355_v11 = vpack.c.bf16 %v841_v6, %v840_v10  ;;  %v2617_v12 = vpack.i.bf16 %v841_v6, %v840_v10 }
 0x731   :  { %2623 = vrot.lane.b32.xlu0 %v2602_v53, %s2705_s14  ;;  %2618 = vrot.lane.b32.xlu1 %v2617_v12, %s2704_s13  ;;  %v846_v53 = vld [vmem:[%s3390_s1 + $0x200] sm:$0xff] }
 0x735   :  { %2633 = vrot.lane.b32.xlu0 %v2612_v4, %s2705_s14  ;;  %2628 = vrot.lane.b32.xlu1 %v2607_v60, %s2705_s14  ;;  %v852_v60 = vld [vmem:[%s3390_s1 + $0x230] sm:$0xff] }
 0x739   :  { %2638 = vrot.lane.b32.xlu1 %v2617_v12, %s2705_s14 }
 0x797   :  { %v2604_v14 = vpop.permute.xlu0 %2603 }
 0x798   :  { %v2606_v15 = vunpack.i.h.bf16 %v2604_v14  ;;  %v2605_v16 = vunpack.i.l.bf16 %v2604_v14 }
 0x79a   :  { %v2334_v17 = vpack.c.bf16 %v2606_v15, %v2605_v16 }
 0x79b   :  { %v2609_v19 = vpop.permute.xlu1 %2608 }
 0x79c   :  { %v2611_v21 = vunpack.i.h.bf16 %v2609_v19  ;;  %v2610_v22 = vunpack.i.l.bf16 %v2609_v19  ;;  %2335 = vmatpush1.bf16.msra.mxu1 %v2334_v17 }
 0x79d   :  { %2336 = vmatprep.subr.bf16.mxu1 %v2708_v61 }
 0x79e   :  { %v2337_v23 = vpack.c.bf16 %v2611_v21, %v2610_v22 }
 0x79f   :  { %v2614_v24 = vpop.permute.xlu0 %2613 }
 0x7a0   :  { %v2616_v25 = vunpack.i.h.bf16 %v2614_v24  ;;  %v2615_v26 = vunpack.i.l.bf16 %v2614_v24  ;;  %2338 = vmatpush1.bf16.msra.mxu1 %v2337_v23 }
 0x7a1   :  { %2339 = vmatprep.subr.bf16.mxu1 %v2708_v61 }
 0x7a2   :  { %v2340_v27 = vpack.c.bf16 %v2616_v25, %v2615_v26 }
 0x7a3   :  { %v2619_v28 = vpop.permute.xlu1 %2618  ;;  %v2624_v32 = vpop.permute.xlu0 %2623 }
 0x7a4   :  { %v2621_v29 = vunpack.i.h.bf16 %v2619_v28  ;;  %v2620_v30 = vunpack.i.l.bf16 %v2619_v28  ;;  %2341 = vmatpush1.bf16.msra.mxu1 %v2340_v27  ;;  %v2626_v33 = vunpack.i.h.bf16 %v2624_v32  ;;  %v2625_v35 = vunpack.i.l.bf16 %v2624_v32 }
 0x7a5   :  { %2342 = vmatprep.subr.bf16.mxu1 %v2708_v61 }
 0x7a6   :  { %v2343_v31 = vpack.c.bf16 %v2621_v29, %v2620_v30  ;;  %v2358_v37 = vpack.c.bf16 %v2626_v33, %v2625_v35 }
 0x7a7   :  { %v2629_v36 = vpop.permute.xlu1 %2628  ;;  %v2634_v40 = vpop.permute.xlu0 %2633 }
 0x7a8   :  { %2344 = vmatpush1.bf16.msra.mxu1 %v2343_v31  ;;  %v2631_v38 = vunpack.i.h.bf16 %v2629_v36  ;;  %v2630_v39 = vunpack.i.l.bf16 %v2629_v36  ;;  %v2636_v5 = vunpack.i.h.bf16 %v2634_v40  ;;  %v2635_v41 = vunpack.i.l.bf16 %v2634_v40 }
 0x7a9   :  { %2345 = vmatprep.subr.bf16.mxu1 %v2708_v61 }
 0x7aa   :  { %v2361_v42 = vpack.c.bf16 %v2631_v38, %v2630_v39  ;;  %v2364_v44 = vpack.c.bf16 %v2636_v5, %v2635_v41  ;;  %v1028_v5 = vld [vmem:[%s3390_s1 + $0x268] sm:$0xff] }
 0x7ab   :  { %v2639_v43 = vpop.permute.xlu1 %2638  ;;  %1783 = vmatprep.mubr.msk.f32.mxu0 %vm367_vm9, %v1028_v5  ;;  %v1274_v5 = vld [vmem:[%s3390_s1 + $0x350] sm:$0xff] }
 0x7ac   :  { %2347 = vmatpush1.bf16.msra.mxu1 %v2346_v51  ;;  %v2641_v46 = vunpack.i.h.bf16 %v2639_v43  ;;  %v2640_v47 = vunpack.i.l.bf16 %v2639_v43  ;;  %v844_v51 = vld [vmem:[%s3390_s1 + $0x1f0] sm:$0xff] }
 0x7ad   :  { %2348 = vmatprep.subr.bf16.mxu1 %v2708_v61 }
 0x7ae   :  { %v2367_v48 = vpack.c.bf16 %v2641_v46, %v2640_v47 }
 0x7b0   :  { %2350 = vmatpush1.bf16.msra.mxu1 %v2349_v58  ;;  %v850_v58 = vld [vmem:[%s3390_s1 + $0x220] sm:$0xff] }
 0x7b1   :  { %2351 = vmatprep.subr.bf16.mxu1 %v2708_v61 }
 0x7b4   :  { %2353 = vmatpush1.bf16.msra.mxu1 %v2352_v1  ;;  %v856_v1 = vld [vmem:[%s3390_s1 + $0x250] sm:$0xff] }
 0x7b5   :  { %2354 = vmatprep.subr.bf16.mxu1 %v2708_v61 }
 0x7b8   :  { %2356 = vmatpush1.bf16.msra.mxu1 %v2355_v11 }
 0x7b9   :  { %2357 = vmatprep.subr.bf16.mxu1 %v2708_v61 }
 0x7bc   :  { %2359 = vmatpush1.bf16.msra.mxu1 %v2358_v37 }
 0x7bd   :  { %2360 = vmatprep.subr.bf16.mxu1 %v2708_v61 }
 0x7c0   :  { %2362 = vmatpush1.bf16.msra.mxu1 %v2361_v42 }
 0x7c1   :  { %2363 = vmatprep.subr.bf16.mxu1 %v2708_v61 }
 0x7c4   :  { %2365 = vmatpush1.bf16.msra.mxu1 %v2364_v44 }
 0x7c5   :  { %2366 = vmatprep.subr.bf16.mxu1 %v2708_v61 }
 0x7c8   :  { %2368 = vmatpush1.bf16.msra.mxu1 %v2367_v48 }
 0x7c9   :  { %962 = vmatprep.subr.mxu1 %v2706_v8 }
 0x7cc   :  { %1773 = vmatpush1.msk.msra.mxu1 %vm70_vm5, %v2903_v54 }
 0x7cd   :  { %979 = vmatmul.mubr.f32.vlgmr.msra.gmra.mrb[18].mxu1 %v842_v49  ;;  %2405 = vmatprep.subr.bf16.mxu1 %v2708_v61 }
 0x7ce   :  { %1775 = vmatprep.mubr.msk.f32.mxu1 %vm367_vm9, %v845_v50 }
 0x7d1   :  { %984 = vmatmul.mubr.f32.gmra.mrb[20].mxu1 %v844_v51 }
 0x7d2   :  { %1776 = vmatprep.mubr.msk.f32.mxu1 %vm367_vm9, %v847_v52 }
 0x7d5   :  { %989 = vmatmul.mubr.f32.gmra.mrb[22].mxu1 %v846_v53 }
 0x7d6   :  { %1777 = vmatprep.mubr.msk.f32.mxu1 %vm367_vm9, %v849_v55 }
 0x7d9   :  { %994 = vmatmul.mubr.f32.gmra.mrb[24].mxu1 %v848_v56 }
 0x7da   :  { %1778 = vmatprep.mubr.msk.f32.mxu1 %vm367_vm9, %v851_v57 }
 0x7dd   :  { %999 = vmatmul.mubr.f32.gmra.mrb[26].mxu1 %v850_v58 }
 0x7de   :  { %1779 = vmatprep.mubr.msk.f32.mxu1 %vm367_vm9, %v853_v59 }
 0x7e1   :  { %1004 = vmatmul.mubr.f32.gmra.mrb[28].mxu1 %v852_v60 }
 0x7e2   :  { %1780 = vmatprep.mubr.msk.f32.mxu1 %vm367_vm9, %v855_v62 }
 0x7e5   :  { %1009 = vmatmul.mubr.f32.gmra.mrb[30].mxu1 %v854_v63 }
 0x7e6   :  { %1781 = vmatprep.mubr.msk.f32.mxu1 %vm367_vm9, %v857_v0 }
 0x7e9   :  { %1014 = vmatmul.mubr.f32.gmra.mrb[32].mxu1 %v856_v1 }
 0x7ea   :  { %2093 = vmatprep.mubr.msk.f32.mxu1 %vm2709_vm10, %v2706_v8 }
 0x8a0   :  { %v980_v2 = vpop.f32.mrb[18].mxu1 }
 0x8a1   :  { %v982_v4 = vpop.f32.mrb[19].mxu1  ;;  %v3080_v7 = vmul.f32 %v980_v2, %v2903_v54 }
 0x8a4   :  { %v985_v6 = vpop.f32.mrb[20].mxu1 }
 0x8a5   :  { %v1020_v10 = vmul.f32 %v985_v6, %v2903_v54  ;;  %v987_v11 = vpop.f32.mrb[21].mxu1 }
 0x8a7   :  { %v2382_v12 = vpack.c.bf16 %v1020_v10, %v3080_v7  ;;  %v2642_v13 = vpack.i.bf16 %v1020_v10, %v3080_v7 }
 0x8a8   :  { %v990_v14 = vpop.f32.mrb[22].mxu1 }
 0x8a9   :  { %2643 = vrot.lane.b32.xlu0 %v2642_v13, %s2704_s13  ;;  %v992_v15 = vpop.f32.mrb[23].mxu1  ;;  %v1021_v17 = vmul.f32 %v990_v14, %v2903_v54 }
 0x8ac   :  { %v995_v16 = vpop.f32.mrb[24].mxu1 }
 0x8ad   :  { %v1022_v19 = vmul.f32 %v995_v16, %v2903_v54  ;;  %v997_v21 = vpop.f32.mrb[25].mxu1  ;;  %v1264_v16 = vld [vmem:[%s3390_s1 + $0x2b0] sm:$0xff] }
 0x8af   :  { %v2385_v22 = vpack.c.bf16 %v1022_v19, %v1021_v17  ;;  %v2647_v23 = vpack.i.bf16 %v1022_v19, %v1021_v17  ;;  %v1265_v17 = vld [vmem:[%s3390_s1 + $0x2c0] sm:$0xff] }
 0x8b0   :  { %v1000_v24 = vpop.f32.mrb[26].mxu1  ;;  %v1027_v19 = vld [vmem:[%s3390_s1 + $0x260] sm:$0xff]  ;;  %v2424_v21 = vpack.c.bf16 %v1265_v17, %v1264_v16  ;;  %v1462_v17 = vld [vmem:[%s3390_s1 + $0x5b0] sm:$0xff] }
 0x8b1   :  { %2648 = vrot.lane.b32.xlu1 %v2647_v23, %s2704_s13  ;;  %v1002_v25 = vpop.f32.mrb[27].mxu1  ;;  %v1023_v27 = vmul.f32 %v1000_v24, %v2903_v54  ;;  %v1267_v24 = vld [vmem:[%s3390_s1 + $0x2e0] sm:$0xff] }
 0x8b2   :  { %v1029_v25 = vld [vmem:[%s3390_s1 + $0x270] sm:$0xff]  ;;  %v1461_v16 = vld [vmem:[%s3390_s1 + $0x5a0] sm:$0xff] }
 0x8b4   :  { %v1005_v26 = vpop.f32.mrb[28].mxu1 }
 0x8b5   :  { %v1024_v28 = vmul.f32 %v1005_v26, %v2903_v54  ;;  %v1007_v29 = vpop.f32.mrb[29].mxu1 }
 0x8b6   :  { %v1269_v29 = vld [vmem:[%s3390_s1 + $0x300] sm:$0xff] }
 0x8b7   :  { %v2388_v30 = vpack.c.bf16 %v1024_v28, %v1023_v27  ;;  %v2652_v31 = vpack.i.bf16 %v1024_v28, %v1023_v27  ;;  %v1032_v27 = vld [vmem:[%s3390_s1 + $0x288] sm:$0xff]  ;;  %v1268_v28 = vld [vmem:[%s3390_s1 + $0x2f0] sm:$0xff] }
 0x8b8   :  { %v1010_v32 = vpop.f32.mrb[30].mxu1 }
 0x8b9   :  { %2653 = vrot.lane.b32.xlu0 %v2652_v31, %s2704_s13  ;;  %v1012_v33 = vpop.f32.mrb[31].mxu1  ;;  %v1025_v36 = vmul.f32 %v1010_v32, %v2903_v54  ;;  %v1034_v32 = vld [vmem:[%s3390_s1 + $0x298] sm:$0xff] }
 0x8ba   :  { %v1270_v33 = vld [vmem:[%s3390_s1 + $0x310] sm:$0xff] }
 0x8bc   :  { %v1015_v35 = vpop.f32.mrb[32].mxu1 }
 0x8bd   :  { %v1026_v37 = vmul.f32 %v1015_v35, %v2903_v54  ;;  %2663 = vrot.lane.b32.xlu0 %v2642_v13, %s2705_s14  ;;  %v1017_v38 = vpop.f32.mrb[33].mxu1  ;;  %v1271_v35 = vld [vmem:[%s3390_s1 + $0x320] sm:$0xff] }
 0x8be   :  { %v1272_v38 = vld [vmem:[%s3390_s1 + $0x330] sm:$0xff] }
 0x8bf   :  { %v2391_v39 = vpack.c.bf16 %v1026_v37, %v1025_v36  ;;  %v2657_v40 = vpack.i.bf16 %v1026_v37, %v1025_v36  ;;  %v1033_v36 = vld [vmem:[%s3390_s1 + $0x290] sm:$0xff]  ;;  %v2433_v37 = vpack.c.bf16 %v1271_v35, %v1270_v33 }
 0x8c1   :  { %2673 = vrot.lane.b32.xlu0 %v2652_v31, %s2705_s14  ;;  %2658 = vrot.lane.b32.xlu1 %v2657_v40, %s2704_s13  ;;  %v2430_v31 = vpack.c.bf16 %v1269_v29, %v1268_v28 }
 0x8c5   :  { %2668 = vrot.lane.b32.xlu1 %v2647_v23, %s2705_s14  ;;  %v1266_v23 = vld [vmem:[%s3390_s1 + $0x2d0] sm:$0xff] }
 0x8c6   :  { %v2427_v26 = vpack.c.bf16 %v1267_v24, %v1266_v23 }
 0x8c9   :  { %2678 = vrot.lane.b32.xlu1 %v2657_v40, %s2705_s14 }
 0x91b   :  { %v2644_v41 = vpop.permute.xlu0 %2643 }
 0x91c   :  { %v2646_v42 = vunpack.i.h.bf16 %v2644_v41  ;;  %v2645_v43 = vunpack.i.l.bf16 %v2644_v41  ;;  %v1275_v41 = vld [vmem:[%s3390_s1 + $0x360] sm:$0xff] }
 0x91e   :  { %v2370_v44 = vpack.c.bf16 %v2646_v42, %v2645_v43  ;;  %v2439_v42 = vpack.c.bf16 %v1275_v41, %v1274_v5  ;;  %v1276_v43 = vld [vmem:[%s3390_s1 + $0x370] sm:$0xff]  ;;  %v1463_v5 = vld [vmem:[%s3390_s1 + $0x5c0] ss:$0 sm:$0xff] }
 0x920   :  { %2371 = vmatpush1.bf16.msra.mxu0 %v2370_v44  ;;  %v1277_v44 = vld [vmem:[%s3390_s1 + $0x380] sm:$0xff] }
 0x921   :  { %2372 = vmatprep.subr.bf16.mxu0 %v2708_v61 }
 0x923   :  { %v2649_v46 = vpop.permute.xlu1 %2648 }
 0x924   :  { %v2651_v47 = vunpack.i.h.bf16 %v2649_v46  ;;  %v2650_v48 = vunpack.i.l.bf16 %v2649_v46  ;;  %v2442_v46 = vpack.c.bf16 %v1277_v44, %v1276_v43 }
 0x926   :  { %v2373_v49 = vpack.c.bf16 %v2651_v47, %v2650_v48  ;;  %v568_v47 = vmul.f32 %v2934_v20, %v2747_v18  ;;  %v3194_v48 = vsub.s32 0, %v2735_v3  ;;  %v1447_v3 = vld [vmem:[%s3390_s1 + $0x4c0] sm:$0xff]  ;;  %v1448_v20 = vld [vmem:[%s3390_s1 + $0x4d0] sm:$0xff] }
 0x928   :  { %2374 = vmatpush1.bf16.msra.mxu0 %v2373_v49  ;;  %v1278_v49 = vld [vmem:[%s3390_s1 + $0x390] sm:$0xff] }
 0x929   :  { %2375 = vmatprep.subr.bf16.mxu0 %v2708_v61 }
 0x92b   :  { %v2654_v50 = vpop.permute.xlu0 %2653 }
 0x92c   :  { %v2656_v51 = vunpack.i.h.bf16 %v2654_v50  ;;  %v2655_v52 = vunpack.i.l.bf16 %v2654_v50  ;;  %v1279_v50 = vld [vmem:[%s3390_s1 + $0x3a0] sm:$0xff] }
 0x92e   :  { %v2376_v53 = vpack.c.bf16 %v2656_v51, %v2655_v52  ;;  %v2445_v51 = vpack.c.bf16 %v1279_v50, %v1278_v49  ;;  %v1262_v52 = vrot.slane %v568_v47, %v3194_v48 }
 0x92f   :  { %v2664_v59 = vpop.permute.xlu0 %2663 }
 0x930   :  { %2377 = vmatpush1.bf16.msra.mxu0 %v2376_v53  ;;  %v2666_v60 = vunpack.i.h.bf16 %v2664_v59  ;;  %v2665_v62 = vunpack.i.l.bf16 %v2664_v59  ;;  %v2472_v53 = vpack.c.bf16 %v1448_v20, %v1447_v3  ;;  %v1451_v59 = vld [vmem:[%s3390_s1 + $0x500] sm:$0xff] }
 0x931   :  { %2378 = vmatprep.subr.bf16.mxu0 %v2708_v61 }
 0x932   :  { %v2394_v0 = vpack.c.bf16 %v2666_v60, %v2665_v62  ;;  %v1452_v60 = vld [vmem:[%s3390_s1 + $0x510] sm:$0xff] }
 0x933   :  { %v2659_v55 = vpop.permute.xlu1 %2658  ;;  %v2674_v4 = vpop.permute.xlu0 %2673  ;;  %v2478_v62 = vpack.c.bf16 %v1452_v60, %v1451_v59 }
 0x934   :  { %v2661_v56 = vunpack.i.h.bf16 %v2659_v55  ;;  %v2660_v57 = vunpack.i.l.bf16 %v2659_v55  ;;  %v2676_v6 = vunpack.i.h.bf16 %v2674_v4  ;;  %v2675_v7 = vunpack.i.l.bf16 %v2674_v4  ;;  %v1456_v4 = vld [vmem:[%s3390_s1 + $0x550] sm:$0xff] }
 0x935   :  { %v1263_v55 = vmul.f32 %v2743_v9, %v1262_v52 }
 0x936   :  { %v2379_v58 = vpack.c.bf16 %v2661_v56, %v2660_v57  ;;  %v1449_v56 = vld [vmem:[%s3390_s1 + $0x4e0] sm:$0xff]  ;;  %v1450_v57 = vld [vmem:[%s3390_s1 + $0x4f0] sm:$0xff] }
 0x937   :  { %v2669_v63 = vpop.permute.xlu1 %2668 }
 0x938   :  { %2380 = vmatpush1.bf16.msra.mxu0 %v2379_v58  ;;  %v2671_v1 = vunpack.i.h.bf16 %v2669_v63  ;;  %v2670_v2 = vunpack.i.l.bf16 %v2669_v63  ;;  %v2475_v58 = vpack.c.bf16 %v1450_v57, %v1449_v56  ;;  %v1453_v63 = vld [vmem:[%s3390_s1 + $0x520] sm:$0xff] }
 0x939   :  { %2381 = vmatprep.subr.bf16.mxu0 %v2708_v61 }
 0x93a   :  { %v2397_v10 = vpack.c.bf16 %v2671_v1, %v2670_v2  ;;  %v1455_v2 = vld [vmem:[%s3390_s1 + $0x540] sm:$0xff] }
 0x93b   :  { %v2679_v11 = vpop.permute.xlu1 %2678 }
 0x93c   :  { %2383 = vmatpush1.bf16.msra.mxu0 %v2382_v12  ;;  %v2400_v12 = vpack.c.bf16 %v2676_v6, %v2675_v7  ;;  %v2681_v13 = vunpack.i.h.bf16 %v2679_v11  ;;  %v2680_v14 = vunpack.i.l.bf16 %v2679_v11  ;;  %v2484_v6 = vpack.c.bf16 %v1456_v4, %v1455_v2  ;;  %v1457_v7 = vld [vmem:[%s3390_s1 + $0x560] sm:$0xff] }
 0x93d   :  { %2384 = vmatprep.subr.bf16.mxu0 %v2708_v61  ;;  %v1168_v2 = vld [vmem:[%s3390_s1 + $0x2a0] ss:$0 sm:$0xff] }
 0x93e   :  { %v2403_v15 = vpack.c.bf16 %v2681_v13, %v2680_v14  ;;  %v1460_v13 = vld [vmem:[%s3390_s1 + $0x590] sm:$0xff] }
 0x940   :  { %2386 = vmatpush1.bf16.msra.mxu0 %v2385_v22  ;;  %v1030_v22 = vld [vmem:[%s3390_s1 + $0x278] sm:$0xff] }
 0x941   :  { %2387 = vmatprep.subr.bf16.mxu0 %v2708_v61 }
 0x944   :  { %2389 = vmatpush1.bf16.msra.mxu0 %v2388_v30  ;;  %v1031_v30 = vld [vmem:[%s3390_s1 + $0x280] sm:$0xff] }
 0x945   :  { %2390 = vmatprep.subr.bf16.mxu0 %v2708_v61 }
 0x948   :  { %2392 = vmatpush1.bf16.msra.mxu0 %v2391_v39  ;;  %v1273_v39 = vld [vmem:[%s3390_s1 + $0x340] sm:$0xff] }
 0x949   :  { %2393 = vmatprep.subr.bf16.mxu0 %v2708_v61  ;;  %v2436_v40 = vpack.c.bf16 %v1273_v39, %v1272_v38 }
 0x94c   :  { %2395 = vmatpush1.bf16.msra.mxu0 %v2394_v0  ;;  %v1454_v0 = vld [vmem:[%s3390_s1 + $0x530] sm:$0xff] }
 0x94d   :  { %2396 = vmatprep.subr.bf16.mxu0 %v2708_v61  ;;  %v2481_v1 = vpack.c.bf16 %v1454_v0, %v1453_v63  ;;  %v1355_v0 = vld [vmem:[%s3390_s1 + $0x3b0] sm:$0xff] }
 0x950   :  { %2398 = vmatpush1.bf16.msra.mxu0 %v2397_v10  ;;  %v1458_v10 = vld [vmem:[%s3390_s1 + $0x570] sm:$0xff] }
 0x951   :  { %2399 = vmatprep.subr.bf16.mxu0 %v2708_v61  ;;  %v2487_v11 = vpack.c.bf16 %v1458_v10, %v1457_v7  ;;  %v1358_v7 = vld [vmem:[%s3390_s1 + $0x3e0] sm:$0xff] }
 0x954   :  { %2401 = vmatpush1.bf16.msra.mxu0 %v2400_v12  ;;  %v1459_v12 = vld [vmem:[%s3390_s1 + $0x580] sm:$0xff] }
 0x955   :  { %2402 = vmatprep.subr.bf16.mxu0 %v2708_v61  ;;  %v2490_v14 = vpack.c.bf16 %v1460_v13, %v1459_v12  ;;  %v1360_v12 = vld [vmem:[%s3390_s1 + $0x400] sm:$0xff] }
 0x958   :  { %2404 = vmatpush1.bf16.msra.mxu0 %v2403_v15  ;;  %v477_v15 = vmul.f32 %v2988_v45, %v2747_v18 }
 0x959   :  { %1127 = vmatprep.subr.mxu0 %v2706_v8 }
 0x95c   :  { %1782 = vmatpush1.msk.msra.mxu0 %vm70_vm5, %v2903_v54 }
 0x95d   :  { %1144 = vmatmul.mubr.f32.vlgmr.msra.gmra.mrb[18].mxu0 %v1027_v19  ;;  %2423 = vmatprep.subr.bf16.mxu0 %v2708_v61  ;;  %v2493_v19 = vpack.c.bf16 %v1462_v17, %v1461_v16  ;;  %v1363_v17 = vld [vmem:[%s3390_s1 + $0x430] sm:$0xff] }
 0x95e   :  { %2425 = vmatpush3.bf16.msra.mxu0 %v2424_v21  ;;  %1784 = vmatprep.mubr.msk.f32.mxu0 %vm367_vm9, %v1030_v22  ;;  %v1445_v21 = vrot.slane %v477_v15, %v3194_v48  ;;  %v1362_v15 = vld [vmem:[%s3390_s1 + $0x420] sm:$0xff] }
 0x95f   :  { %2426 = vmatprep.subr.bf16.mxu0 %v2708_v61 }
 0x960   :  { %v1446_v22 = vmul.f32 %v2743_v9, %v1445_v21 }
 0x961   :  { %1149 = vmatmul.mubr.f32.gmra.mrb[20].mxu0 %v1029_v25 }
 0x962   :  { %2428 = vmatpush3.bf16.msra.mxu0 %v2427_v26  ;;  %1785 = vmatprep.mubr.msk.f32.mxu0 %vm367_vm9, %v1032_v27 }
 0x963   :  { %2429 = vmatprep.subr.bf16.mxu0 %v2708_v61 }
 0x965   :  { %1154 = vmatmul.mubr.f32.gmra.mrb[22].mxu0 %v1031_v30 }
 0x966   :  { %2431 = vmatpush3.bf16.msra.mxu0 %v2430_v31  ;;  %1786 = vmatprep.mubr.msk.f32.mxu0 %vm367_vm9, %v1034_v32 }
 0x967   :  { %2432 = vmatprep.subr.bf16.mxu0 %v2708_v61 }
 0x969   :  { %1159 = vmatmul.mubr.f32.gmra.mrb[24].mxu0 %v1033_v36 }
 0x96a   :  { %2434 = vmatpush3.bf16.msra.mxu0 %v2433_v37  ;;  %2128 = vmatprep.mubr.msk.f32.mxu0 %vm2709_vm10, %v2706_v8 }
 0x96b   :  { %2435 = vmatprep.subr.bf16.mxu0 %v2708_v61 }
 0x96e   :  { %2437 = vmatpush3.bf16.msra.mxu0 %v2436_v40 }
 0x96f   :  { %2438 = vmatprep.subr.bf16.mxu0 %v2708_v61 }
 0x972   :  { %2440 = vmatpush3.bf16.msra.mxu0 %v2439_v42 }
 0x973   :  { %2441 = vmatprep.subr.bf16.mxu0 %v2708_v61 }
 0x976   :  { %2443 = vmatpush3.bf16.msra.mxu0 %v2442_v46 }
 0x977   :  { %2444 = vmatprep.subr.bf16.mxu0 %v2708_v61 }
 0x97a   :  { %2446 = vmatpush3.bf16.msra.mxu0 %v2445_v51 }
 0x97b   :  { %2471 = vmatprep.subr.bf16.mxu0 %v2708_v61 }
 0x97d   :  { %2129 = vmatmul.mubr.f32.vlgmr.msra.gmra.mrb[26].mxu0 %v1263_v55 }
 0x97e   :  { %2473 = vmatpush3.bf16.msra.mxu0 %v2472_v53  ;;  %2198 = vmatprep.mubr.msk.f32.mxu0 %vm2709_vm10, %v2706_v8 }
 0x97f   :  { %2474 = vmatprep.subr.bf16.mxu0 %v2708_v61 }
 0x982   :  { %2476 = vmatpush3.bf16.msra.mxu0 %v2475_v58 }
 0x983   :  { %2477 = vmatprep.subr.bf16.mxu0 %v2708_v61 }
 0x986   :  { %2479 = vmatpush3.bf16.msra.mxu0 %v2478_v62 }
 0x987   :  { %2480 = vmatprep.subr.bf16.mxu0 %v2708_v61 }
 0x98a   :  { %2482 = vmatpush3.bf16.msra.mxu0 %v2481_v1  ;;  %v1356_v1 = vld [vmem:[%s3390_s1 + $0x3c0] sm:$0xff] }
 0x98b   :  { %2483 = vmatprep.subr.bf16.mxu0 %v2708_v61  ;;  %v2448_v4 = vpack.c.bf16 %v1356_v1, %v1355_v0 }
 0x98e   :  { %2485 = vmatpush3.bf16.msra.mxu0 %v2484_v6  ;;  %v1357_v6 = vld [vmem:[%s3390_s1 + $0x3d0] sm:$0xff] }
 0x98f   :  { %2486 = vmatprep.subr.bf16.mxu0 %v2708_v61  ;;  %v2451_v10 = vpack.c.bf16 %v1358_v7, %v1357_v6 }
 0x992   :  { %2488 = vmatpush3.bf16.msra.mxu0 %v2487_v11  ;;  %v1359_v11 = vld [vmem:[%s3390_s1 + $0x3f0] sm:$0xff] }
 0x993   :  { %2489 = vmatprep.subr.bf16.mxu0 %v2708_v61  ;;  %v2454_v13 = vpack.c.bf16 %v1360_v12, %v1359_v11 }
 0x996   :  { %2491 = vmatpush3.bf16.msra.mxu0 %v2490_v14  ;;  %v1361_v14 = vld [vmem:[%s3390_s1 + $0x410] sm:$0xff] }
 0x997   :  { %2492 = vmatprep.subr.bf16.mxu0 %v2708_v61  ;;  %v2457_v16 = vpack.c.bf16 %v1362_v15, %v1361_v14 }
 0x99a   :  { %2494 = vmatpush3.bf16.msra.mxu0 %v2493_v19  ;;  %v1364_v19 = vld [vmem:[%s3390_s1 + $0x440] sm:$0xff] }
 0x99b   :  { %v2460_v21 = vpack.c.bf16 %v1364_v19, %v1363_v17 }
 0x99d   :  { %2199 = vmatmul.mubr.f32.vlgmr.msra.gmra.mrb[28].mxu0 %v1446_v22  ;;  %v1365_v22 = vld [vmem:[%s3390_s1 + $0x450] sm:$0xff] }
 0xa30   :  { %v1145_v18 = vpop.f32.mrb[18].mxu0 }
 0xa31   :  { %v1147_v45 = vpop.f32.mrb[19].mxu0  ;;  %v1164_v24 = vmul.f32 %v1145_v18, %v2903_v54  ;;  %v1366_v18 = vld [vmem:[%s3390_s1 + $0x460] sm:$0xff] }
 0xa32   :  { %v2463_v45 = vpack.c.bf16 %v1366_v18, %v1365_v22 }
 0xa34   :  { %v1150_v23 = vpop.f32.mrb[20].mxu0 }
 0xa35   :  { %v1165_v25 = vmul.f32 %v1150_v23, %v2903_v54  ;;  %v1152_v26 = vpop.f32.mrb[21].mxu0  ;;  %v1367_v23 = vld [vmem:[%s3390_s1 + $0x470] sm:$0xff] }
 0xa36   :  { %v1369_v26 = vld [vmem:[%s3390_s1 + $0x490] sm:$0xff] }
 0xa37   :  { %v2412_v27 = vpack.c.bf16 %v1165_v25, %v1164_v24  ;;  %v2682_v28 = vpack.i.bf16 %v1165_v25, %v1164_v24  ;;  %v1368_v24 = vld [vmem:[%s3390_s1 + $0x480] sm:$0xff] }
 0xa38   :  { %v1155_v29 = vpop.f32.mrb[22].mxu0  ;;  %v2466_v25 = vpack.c.bf16 %v1368_v24, %v1367_v23 }
 0xa39   :  { %2683 = vrot.lane.b32.xlu0 %v2682_v28, %s2704_s13  ;;  %v1157_v30 = vpop.f32.mrb[23].mxu0  ;;  %v1166_v32 = vmul.f32 %v1155_v29, %v2903_v54 }
 0xa3c   :  { %v1160_v31 = vpop.f32.mrb[24].mxu0 }
 0xa3d   :  { %v1167_v9 = vmul.f32 %v1160_v31, %v2903_v54  ;;  %2693 = vrot.lane.b32.xlu0 %v2682_v28, %s2705_s14  ;;  %v1162_v33 = vpop.f32.mrb[25].mxu0 }
 0xa3f   :  { %v2415_v35 = vpack.c.bf16 %v1167_v9, %v1166_v32  ;;  %v2687_v36 = vpack.i.bf16 %v1167_v9, %v1166_v32 }
 0xa41   :  { %2688 = vrot.lane.b32.xlu1 %v2687_v36, %s2704_s13 }
 0xa45   :  { %2698 = vrot.lane.b32.xlu1 %v2687_v36, %s2705_s14 }
 0xa50   :  { %v3276_v37 = vpop.f32.mrb[26].mxu0 }
 0xa51   :  { %v2130_v38 = vpop.f32.mrb[27].mxu0  ;;  %v3280_v39 = vmul.f32 %v3276_v37, %v3276_v37  ;;  %v1540_v33 = vrot.slane %v3276_v37, 2 }
 0xa53   :  { %v1623_v40 = vsel %vm1535_vm15, %v3280_v39, 0.0 }
 0xa5c   :  { %1624 = vadd.xlane.f32.xlu0 %v1623_v40 }
 0xa70   :  { %v1530_v41 = vpop.f32.mrb[28].mxu0 }
 0xa71   :  { %v1531_v42 = vadd.f32 %v1530_v41, %v1463_v5  ;;  %v2200_v43 = vpop.f32.mrb[29].mxu0 }
 0xa73   :  { %v1727_v44 = vsel %vm1726_vm0, %v1531_v42, 0.0  ;;  %v2710_v42 = vmov 1.0  }
 0xa74   :  { %v1728_v46 = vsel %vm25_vm4, %v1727_v44, 0.0 }
 0xa75   :  { %1730 = vst [vmem:[%s3391_s2 + $0x8] sm:$0xff] %v1728_v46 }
 0xaab   :  { %v2684_v47 = vpop.permute.xlu0 %2683 }
 0xaac   :  { %v2686_v49 = vunpack.i.h.bf16 %v2684_v47  ;;  %v2685_v50 = vunpack.i.l.bf16 %v2684_v47 }
 0xaae   :  { %v2406_v51 = vpack.c.bf16 %v2686_v49, %v2685_v50 }
 0xaaf   :  { %v2694_v55 = vpop.permute.xlu0 %2693 }
 0xab0   :  { %2407 = vmatpush3.bf16.msra.mxu1 %v2406_v51  ;;  %v2696_v56 = vunpack.i.h.bf16 %v2694_v55  ;;  %v2695_v57 = vunpack.i.l.bf16 %v2694_v55 }
 0xab1   :  { %2408 = vmatprep.subr.bf16.mxu1 %v2708_v61 }
 0xab2   :  { %v2418_v59 = vpack.c.bf16 %v2696_v56, %v2695_v57 }
 0xab3   :  { %v2689_v52 = vpop.permute.xlu1 %2688 }
 0xab4   :  { %v2691_v3 = vunpack.i.h.bf16 %v2689_v52  ;;  %v2690_v20 = vunpack.i.l.bf16 %v2689_v52 }
 0xab6   :  { %v2409_v53 = vpack.c.bf16 %v2691_v3, %v2690_v20 }
 0xab7   :  { %v2699_v58 = vpop.permute.xlu1 %2698 }
 0xab8   :  { %2410 = vmatpush3.bf16.msra.mxu1 %v2409_v53  ;;  %v2701_v60 = vunpack.i.h.bf16 %v2699_v58  ;;  %v2700_v62 = vunpack.i.l.bf16 %v2699_v58 }
 0xab9   :  { %2411 = vmatprep.subr.bf16.mxu1 %v2708_v61 }
 0xaba   :  { %v2421_v63 = vpack.c.bf16 %v2701_v60, %v2700_v62 }
 0xabc   :  { %2413 = vmatpush3.bf16.msra.mxu1 %v2412_v27  ;;  %v1370_v27 = vld [vmem:[%s3390_s1 + $0x4a0] sm:$0xff] }
 0xabd   :  { %2414 = vmatprep.subr.bf16.mxu1 %v2708_v61  ;;  %v2469_v28 = vpack.c.bf16 %v1370_v27, %v1369_v26 }
 0xac0   :  { %2416 = vmatpush3.bf16.msra.mxu1 %v2415_v35 }
 0xac1   :  { %2417 = vmatprep.subr.bf16.mxu1 %v2708_v61 }
 0xac4   :  { %2419 = vmatpush3.bf16.msra.mxu1 %v2418_v59 }
 0xac5   :  { %2420 = vmatprep.subr.bf16.mxu1 %v2708_v61 }
 0xac8   :  { %2422 = vmatpush3.bf16.msra.mxu1 %v2421_v63 }
 0xac9   :  { %2091 = vmatprep.subr.mxu1 %v2706_v8 }
 0xacc   :  { %2092 = vmatpush3.msk.msra.mxu1 %vm70_vm5, %v2903_v54 }
 0xacd   :  { %2094 = vmatmul.mubr.msk.f32.vlgmr.msra.gmra.mrb[34].mxu1 %vm187_vm8, %v1168_v2  ;;  %2447 = vmatprep.subr.bf16.mxu1 %v2708_v61 }
 0xace   :  { %2449 = vmatpush3.bf16.msra.mxu1 %v2448_v4  ;;  %2163 = vmatprep.mubr.msk.f32.mxu1 %vm2709_vm10, %v2706_v8 }
 0xacf   :  { %2450 = vmatprep.subr.bf16.mxu1 %v2708_v61 }
 0xad2   :  { %2452 = vmatpush3.bf16.msra.mxu1 %v2451_v10 }
 0xad3   :  { %2453 = vmatprep.subr.bf16.mxu1 %v2708_v61 }
 0xad6   :  { %2455 = vmatpush3.bf16.msra.mxu1 %v2454_v13 }
 0xad7   :  { %2456 = vmatprep.subr.bf16.mxu1 %v2708_v61 }
 0xada   :  { %2458 = vmatpush3.bf16.msra.mxu1 %v2457_v16 }
 0xadb   :  { %2459 = vmatprep.subr.bf16.mxu1 %v2708_v61 }
 0xade   :  { %2461 = vmatpush3.bf16.msra.mxu1 %v2460_v21 }
 0xadf   :  { %2462 = vmatprep.subr.bf16.mxu1 %v2708_v61 }
 0xae2   :  { %2464 = vmatpush3.bf16.msra.mxu1 %v2463_v45 }
 0xae3   :  { %2465 = vmatprep.subr.bf16.mxu1 %v2708_v61 }
 0xae6   :  { %2467 = vmatpush3.bf16.msra.mxu1 %v2466_v25 }
 0xae7   :  { %2468 = vmatprep.subr.bf16.mxu1 %v2708_v61  ;;  %v1371_v61 = vld [vmem:[%s3390_s1 + $0x4b0] ss:$0 sm:$0xff] }
 0xaea   :  { %2470 = vmatpush3.bf16.msra.mxu1 %v2469_v28 }
 0xaeb   :  { %2201 = vmatprep.subr.mxu1 %v2706_v8 }
 0xba0   :  { %v1254_v29 = vpop.f32.mrb[34].mxu1 }
 0xba1   :  { %v1258_v30 = vmul.f32 %v1254_v29, %v2903_v54  ;;  %v2095_v31 = vpop.f32.mrb[35].mxu1 }
 0xba3   :  { %v1353_v32 = vrot.slane %v1258_v30, %v3194_v48 }
 0xba5   :  { %v1354_v9 = vmul.f32 %v2894_v34, %v1353_v32  ;;  %v1628_v34 = vrot.slane %v3280_v39, 2 }
 0xba7   :  { %2164 = vmatmul.mubr.f32.vlgmr.msra.gmra.mrb[36].mxu1 %v1354_v9 }
 0xba8   :  { %2202 = vmatpush3.xpose.msk.msra.mxu1 %vm1541_vm1, %v1540_v33  ;;  %2203 = vmatprep.mubr.msk.f32.mxu1 %vm2709_vm10, %v2706_v8 }
 0xba9   :  { %2206 = vmatprep.subr.mxu1 %v2706_v8 }
 0xc7a   :  { %v1438_v54 = vpop.f32.mrb[36].mxu1 }
 0xc7b   :  { %v1439_v35 = vadd.f32 %v1438_v54, %v1371_v61  ;;  %v2165_v36 = vpop.f32.mrb[37].mxu1 }
 0xc7d   :  { %2204 = vmatmul.mubr.msk.f32.vlgmr.msra.gmra.mrb[38].mxu1 %vm1541_vm1, %v1439_v35  ;;  %v1534_v38 = vmul.f32 %v1439_v35, %v3276_v37  ;;  %v1617_v40 = vmul.f32 %v1439_v35, %v1439_v35 }
 0xc7e   :  { %2207 = vmatpush3.xpose.msk.msra.mxu1 %vm1541_vm1, %v1628_v34  ;;  %2208 = vmatprep.mubr.msk.f32.mxu1 %vm2709_vm10, %v2706_v8  ;;  %v1625_v8 = vpop.xlane.xlu0 %1624 }
 0xc7f   :  { %v1536_v5 = vsel %vm1535_vm15, %v1534_v38, 0.0  ;;  %v1618_v41 = vsel %vm1535_vm15, %v1617_v40, 0.0  ;;  %v1626_v51 = vmax.f32 %v1625_v8, 1e-16 }
 0xc80   :  { %1537 = vadd.xlane.f32.xlu0 %v1536_v5  ;;  %1619 = vadd.xlane.f32.xlu1 %v1618_v41 }
 0xc81   :  { %2209 = vmatmul.mubr.msk.f32.vlgmr.msra.gmra.mrb[40].mxu1 %vm1541_vm1, %v2710_v42 }
 0xd0d   :  { %v1538_v49 = vpop.xlane.xlu0 %1537  ;;  %v1620_v50 = vpop.xlane.xlu1 %1619 }
 0xd0e   :  { %v1621_v52 = vmax.f32 %v1620_v50, 1e-16 }
 0xd50   :  { %v1613_v39 = vpop.f32.mrb[38].mxu1 }
 0xd51   :  { %1706 = vrot.lane.b32.xlu1 %v1613_v39, %s2704_s13  ;;  %v2205_v43 = vpop.f32.mrb[39].mxu1 }
 0xd54   :  { %v1700_v37 = vpop.f32.mrb[40].mxu1 }
 0xd55   :  { %v1704_v44 = vmax.f32 %v1700_v37, 1e-16  ;;  %v2210_v46 = vpop.f32.mrb[41].mxu1 }
 0xd57   :  { %v1714_v47 = vrot.slane %v1704_v44, %v3194_v48 }
 0xd59   :  { %1716 = vrot.lane.b32.xlu0 %v1714_v47, %s2704_s13 }
 0xdc3   :  { %v1707_v55 = vpop.permute.xlu1 %1706 }
 0xdc4   :  { %v1710_v57 = vsel %vm1709_vm2, %v1538_v49, %v1707_v55 }
 0xdcb   :  { %v1717_v3 = vpop.permute.xlu0 %1716 }
 0xdcc   :  { %v1719_v20 = vsel %vm1709_vm2, %v1626_v51, %v1717_v3 }
 0xdcd   :  { %v1720_v53 = vmul.f32 %v1719_v20, %v1621_v52 }
 0xdcf   :  { %2702 = vrsqrt.f32 %v1720_v53 }
 0xdd9   :  { %v2703_v56 = vpop.eup %2702 }
 0xdda   :  { %v1722_v58 = vmul.f32 %v2703_v56, %v1710_v57 }
 0xddc   :  { %v1724_v59 = vsel %vm1723_vm3, %v1722_v58, 0.0 }
 0xddd   :  { %v1725_v48 = vsel %vm41_vm14, %v1724_v59, 0.0 }
 0xdde   :  { %1729 = vst [vmem:[%s3391_s2] sm:$0xff] %v1725_v48 }

</bundles_post_ra>
